<compile_context>
chip_gen: v7x
topology: tpu7x:2x2x1
jax: 0.10.0
libtpu: 0.0.40
codegen_flags: <defaults>
</compile_context>

<pallas_src>
import functools

import jax
import jax.numpy as jnp
import numpy as np
from jax import lax
from jax.experimental import pallas as pl
from jax.experimental.pallas import tpu as pltpu


_KNOCKOUT_MAX_K = 16    # small k: O(k) max-knockout; larger k: k-independent bisection
_BISECT_ITERS = 32      # covers the full int32 bit range of nonneg f32 activations
_INTERNAL_SCRATCH = 2 * 2**20   # slack for Mosaic internal scratch


def _sae_kernel(x_ref, we_ref, be_ref, wd_ref, sparse_ref, recon_ref, *, k):
    """One batch tile: encode (bf16 MXU, f32 acc) -> ReLU -> top-k mask -> decode."""
    # ---- encoder: Linear + ReLU (bf16 operands, f32 accumulation) ----------
    # In-kernel cast of the streamed x tile (free on the VPU under the MXU).
    feats = jnp.dot(x_ref[...].astype(we_ref.dtype), we_ref[...],
                    preferred_element_type=jnp.float32)            # (TB, H) f32
    feats = jnp.maximum(feats + be_ref[...], 0.0)                  # bias + ReLU

    # ---- per-row top-k sparsification (f32) --------------------------------
    if k is not None and k < feats.shape[-1]:
        # TODO(synk): exact torch.topk tie-breaking (keep exactly k when the
        # k-th value is duplicated) is not reproduced; ties keep >= k entries.
        if k <= _KNOCKOUT_MAX_K:
            # Value knockout: remove the current row-max (k-1) times; the
            # remaining row-max is the k-th largest value -> threshold.
            def knock_out(_, work):
                cur_max = jnp.max(work, axis=-1, keepdims=True)    # XLU reduce
                return jnp.where(work == cur_max, -jnp.inf, work)  # VPU select

            work = lax.fori_loop(0, k - 1, knock_out, feats, unroll=True)
            thr = jnp.max(work, axis=-1, keepdims=True)
            feats = jnp.where(feats >= thr, feats, 0.0)
        else:
            # k-independent threshold search: ReLU outputs are >= 0, so their
            # int32 bit pattern is monotone in value.  Bisect per row for the
            # largest integer t with count(bits >= t) >= k (== exact k-th
            # largest value) in a fixed 32 iterations, independent of k.
            bits = pltpu.bitcast(feats, jnp.int32)                 # (TB, H)
            lo = jnp.zeros((feats.shape[0], 1), jnp.int32)
            hi = jnp.max(bits, axis=-1, keepdims=True) + 1

            def bisect(_, carry):
                lo, hi = carry
                mid = lo + (hi - lo) // 2
                cnt = jnp.sum((bits >= mid).astype(jnp.int32),     # VPU cmp + XLU sum
                              axis=-1, keepdims=True)
                ge = cnt >= k
                return jnp.where(ge, mid, lo), jnp.where(ge, hi, mid)

            lo, _ = lax.fori_loop(0, _BISECT_ITERS, bisect, (lo, hi))
            feats = jnp.where(bits >= lo, feats, 0.0)

    sparse_ref[...] = feats

    # ---- decoder: Linear, no bias (bf16 operands, f32 accumulation) --------
    recon_ref[...] = jnp.dot(feats.astype(wd_ref.dtype), wd_ref[...],
                             preferred_element_type=jnp.float32)


def _vmem_budget_bytes():
    """Usable per-TensorCore VMEM budget (physical capacity minus headroom)."""
    try:
        cap = int(pltpu.get_tpu_info().vmem_capacity_bytes)
    except Exception:
        kind = jax.devices()[0].device_kind.lower()
        cap = 64 * 2**20 if "v7" in kind else 128 * 2**20
    # v5e/v6e: 128 -> 112 MiB; v7x: 64 -> 56 MiB (headroom for compiler scratch).
    return cap - max(cap // 8, 8 * 2**20)


def _footprint_bytes(tb, D, H, x_itemsize, w_itemsize, weight_buffers):
    weights = weight_buffers * 2 * D * H * w_itemsize        # w_enc + w_dec (bf16)
    bias = weight_buffers * 8 * H * 4                        # (1,H) f32, 8-sublane pad
    tiles = 2 * tb * (D * x_itemsize + H * 4 + D * 4)        # dbl-buffered x/sparse/recon
    return weights + bias + tiles + _INTERNAL_SCRATCH


def _pick_batch_tile(B, fits):
    # Prefer 256/512-row tiles: fills the 2x256x256 MXU on v6e/v7x and amortizes
    # the ~0.35us per-grid-step pipeline overhead; shrink while staying in budget.
    for t in (512, 256, 128, 64, 32, 16, 8):
        if B % t == 0 and fits(t):
            return t
    return B


def _forward_impl(x, we, be, wd, k, batch_tile, single_buffer_weights):
    B, D = x.shape
    H = we.shape[1]
    budget = _vmem_budget_bytes()
    wbuf = 1 if single_buffer_weights else 2
    fits = lambda tb: _footprint_bytes(tb, D, H, x.dtype.itemsize,
                                       we.dtype.itemsize, wbuf) <= budget

    if batch_tile is None:
        batch_tile = _pick_batch_tile(B, fits)
    assert B % batch_tile == 0, (B, batch_tile)
    n_tiles = B // batch_tile

    need = _footprint_bytes(batch_tile, D, H, x.dtype.itemsize, we.dtype.itemsize, wbuf)
    if need > budget:
        # TODO(synk): weights exceed the per-TC VMEM budget; stream the hidden axis
        # with an extra "arbitrary" grid dim + f32 accumulator and a two-pass top-k.
        raise ValueError(f"resident-weight footprint {need}B exceeds VMEM budget {budget}B")
    vmem_limit = int(min(budget, max(need * 1.3, 32 * 2**20)))

    cost = pl.CostEstimate(
        flops=4 * B * D * H,            # encode + decode matmuls
        transcendentals=0,
        bytes_accessed=(B * D * x.dtype.itemsize + 2 * D * H * we.dtype.itemsize
                        + H * 4 + B * H * 4 + B * D * 4),
    )

    # Grid-invariant operands: single VMEM buffer (feedback #1).
    weight_kw = {"pipeline_mode": pl.Buffered(1)} if single_buffer_weights else {}
    kernel = functools.partial(_sae_kernel, k=k)
    return pl.pallas_call(
        kernel,
        out_shape=(
            jax.ShapeDtypeStruct((B, H), jnp.float32),
            jax.ShapeDtypeStruct((B, D), jnp.float32),
        ),
        grid=(n_tiles,),
        in_specs=[
            pl.BlockSpec((batch_tile, D), lambda i: (i, 0)),          # x tile (streamed)
            pl.BlockSpec((D, H), lambda i: (0, 0), **weight_kw),      # w_enc (resident)
            pl.BlockSpec((1, H), lambda i: (0, 0), **weight_kw),      # b_enc (resident)
            pl.BlockSpec((H, D), lambda i: (0, 0), **weight_kw),      # w_dec (resident)
        ],
        out_specs=(
            pl.BlockSpec((batch_tile, H), lambda i: (i, 0)),          # sparse tile
            pl.BlockSpec((batch_tile, D), lambda i: (i, 0)),          # recon tile
        ),
        compiler_params=pltpu.CompilerParams(
            dimension_semantics=("parallel",),
            vmem_limit_bytes=vmem_limit,
        ),
        cost_estimate=cost,
    )(x, we, be, wd)


def topk_sae_forward(x, w_enc, b_enc, w_dec, k=None, *, batch_tile=None):
    """x:(B,D), w_enc:(D,H), b_enc:(H,), w_dec:(H,D) -> (sparse:(B,H) f32, recon:(B,D) f32).

    Pass bf16 weights to hoist the (one-time) weight casts out of the per-call
    path; x stays in its input dtype and is cast per-tile inside the kernel.
    """
    we = w_enc if w_enc.dtype == jnp.bfloat16 else w_enc.astype(jnp.bfloat16)
    wd = w_dec if w_dec.dtype == jnp.bfloat16 else w_dec.astype(jnp.bfloat16)
    be = b_enc.reshape(1, -1).astype(jnp.float32)

    try:
        return _forward_impl(x, we, be, wd, k, batch_tile, single_buffer_weights=True)
    except Exception:
        # TODO(synk): pipeline_mode=pl.Buffered(1) unsupported on this JAX build;
        # fall back to the default double-buffered resident weights.
        return _forward_impl(x, we, be, wd, k, batch_tile, single_buffer_weights=False)


def _reference_forward(x, w_enc, b_enc, w_dec, k=None):
    """Pure-JAX reference mirroring the PyTorch module (same bf16 matmul dtypes)."""
    feats = jnp.dot(x.astype(jnp.bfloat16), w_enc.astype(jnp.bfloat16),
                    preferred_element_type=jnp.float32) + b_enc.astype(jnp.float32)
    feats = jnp.maximum(feats, 0.0)
    if k is not None:
        vals, idx = lax.top_k(feats, k)
        rows = jnp.arange(feats.shape[0])[:, None]
        sparse = jnp.zeros_like(feats).at[rows, idx].set(vals)
    else:
        sparse = feats
    recon = jnp.dot(sparse.astype(jnp.bfloat16), w_dec.astype(jnp.bfloat16),
                    preferred_element_type=jnp.float32)
    return sparse, recon


if __name__ == "__main__":
    # Small but lane-dense, forward-consistent shapes: x is (batch, input_dim).
    # Note: production shapes should keep D, H multiples of 256 and batch tiles
    # of 256+ to fill the v6e/v7x MXU; these demo sizes are intentionally tiny.
    batch, input_dim, hidden_dim = 32, 128, 256

    key = jax.random.PRNGKey(0)
    kx, kwe, kbe, kwd = jax.random.split(key, 4)
    x = jax.random.normal(kx, (batch, input_dim), dtype=jnp.float32)
    w_enc = jax.random.normal(kwe, (input_dim, hidden_dim), jnp.float32) / np.sqrt(input_dim)
    b_enc = jax.random.normal(kbe, (hidden_dim,), jnp.float32) * 0.01
    w_dec = jax.random.normal(kwd, (hidden_dim, input_dim), jnp.float32) / np.sqrt(hidden_dim)

    # Hoisted one-time bf16 weight casts (avoids per-forward cast traffic).
    w_enc_bf16 = w_enc.astype(jnp.bfloat16)
    w_dec_bf16 = w_dec.astype(jnp.bfloat16)

    # k=8  -> knockout path, explicit batch_tile=16 exercises the 2-step grid.
    # k=48 -> k-independent bisection threshold-search path, auto batch tile.
    # k=None -> dense (no sparsification) path.
    for k_test, tile in ((8, 16), (48, None), (None, 16)):
        sparse, recon = topk_sae_forward(x, w_enc_bf16, b_enc, w_dec_bf16,
                                         k=k_test, batch_tile=tile)
        jax.block_until_ready((sparse, recon))

        ref_sparse, ref_recon = _reference_forward(x, w_enc, b_enc, w_dec, k=k_test)
        np.testing.assert_allclose(np.asarray(sparse), np.asarray(ref_sparse),
                                   rtol=1e-4, atol=1e-4)
        np.testing.assert_allclose(np.asarray(recon), np.asarray(ref_recon),
                                   rtol=1e-4, atol=1e-4)
        if k_test is not None:
            # At most k nonzeros per row in the sparse code.
            assert int(np.max(np.count_nonzero(np.asarray(sparse), axis=1))) <= k_test

    print("KERNEL_OK")
</pallas_src>

<mosaic_0001>
module attributes {stable_mosaic.version = 11 : i64} {
  func.func @_sae_kernel(%arg0: i32, %arg1: memref<16x128xf32, #tpu.memory_space<vmem>>, %arg2: memref<128x256xbf16, #tpu.memory_space<vmem>>, %arg3: memref<1x256xf32, #tpu.memory_space<vmem>>, %arg4: memref<256x128xbf16, #tpu.memory_space<vmem>>, %arg5: memref<16x256xf32, #tpu.memory_space<vmem>>, %arg6: memref<16x128xf32, #tpu.memory_space<vmem>>) attributes {dimension_semantics = [#tpu.dimension_semantics<parallel>], iteration_bounds = array<i64: 2>, scalar_prefetch = 0 : i64, scratch_operands = 0 : i64, tpu.core_type = #tpu.core_type<tc>, window_params = [{transform_indices = @transform_0, window_bounds = array<i64: 16, 128>}, {pipeline_mode = #tpu.pipeline_mode<synchronous>, transform_indices = @transform_1, window_bounds = array<i64: 128, 256>}, {pipeline_mode = #tpu.pipeline_mode<synchronous>, transform_indices = @transform_2, window_bounds = array<i64: 1, 256>}, {pipeline_mode = #tpu.pipeline_mode<synchronous>, transform_indices = @transform_3, window_bounds = array<i64: 256, 128>}, {transform_indices = @transform_4, window_bounds = array<i64: 16, 256>}, {transform_indices = @transform_5, window_bounds = array<i64: 16, 128>}]} {
    %c0 = arith.constant 0 : index
    %c0_0 = arith.constant 0 : index
    %0 = vector.load %arg1[%c0, %c0_0] : memref<16x128xf32, #tpu.memory_space<vmem>>, vector<16x128xf32>
    %1 = arith.truncf %0 : vector<16x128xf32> to vector<16x128xbf16>
    %c0_1 = arith.constant 0 : index
    %c0_2 = arith.constant 0 : index
    %2 = vector.load %arg2[%c0_1, %c0_2] : memref<128x256xbf16, #tpu.memory_space<vmem>>, vector<128x256xbf16>
    %cst = arith.constant dense<0.000000e+00> : vector<16x256xf32>
    %3 = tpu.matmul %1, %2, %cst {dimension_numbers = #tpu.dot_dimension_numbers<[1], [0], [0], [1], [0, 0, 1, 1], [], []>} : vector<16x128xbf16>, vector<128x256xbf16>, vector<16x256xf32> -> vector<16x256xf32>
    %c0_3 = arith.constant 0 : index
    %c0_4 = arith.constant 0 : index
    %4 = vector.load %arg3[%c0_3, %c0_4] : memref<1x256xf32, #tpu.memory_space<vmem>>, vector<1x256xf32>
    %5 = vector.broadcast %4 : vector<1x256xf32> to vector<16x256xf32>
    %6 = arith.addf %3, %5 : vector<16x256xf32>
    %cst_5 = arith.constant 0.000000e+00 : f32
    %7 = vector.broadcast %cst_5 : f32 to vector<16x256xf32>
    %8 = arith.maximumf %6, %7 : vector<16x256xf32>
    %c0_i32 = arith.constant 0 : i32
    %cst_6 = arith.constant dense<0xFF800000> : vector<16xf32>
    %9 = vector.multi_reduction <maximumf>, %8, %cst_6 [1] : vector<16x256xf32> to vector<16xf32>
    %10 = vector.shape_cast %9 : vector<16xf32> to vector<16x1xf32>
    %11 = vector.broadcast %10 : vector<16x1xf32> to vector<16x256xf32>
    %12 = arith.cmpf oeq, %8, %11 : vector<16x256xf32>
    %cst_7 = arith.constant 0xFF800000 : f32
    %13 = vector.broadcast %cst_7 : f32 to vector<16x256xf32>
    %14 = arith.select %12, %13, %8 : vector<16x256xi1>, vector<16x256xf32>
    %c1_i32 = arith.constant 1 : i32
    %cst_8 = arith.constant dense<0xFF800000> : vector<16xf32>
    %15 = vector.multi_reduction <maximumf>, %14, %cst_8 [1] : vector<16x256xf32> to vector<16xf32>
    %16 = vector.shape_cast %15 : vector<16xf32> to vector<16x1xf32>
    %17 = vector.broadcast %16 : vector<16x1xf32> to vector<16x256xf32>
    %18 = arith.cmpf oeq, %14, %17 : vector<16x256xf32>
    %cst_9 = arith.constant 0xFF800000 : f32
    %19 = vector.broadcast %cst_9 : f32 to vector<16x256xf32>
    %20 = arith.select %18, %19, %14 : vector<16x256xi1>, vector<16x256xf32>
    %c2_i32 = arith.constant 2 : i32
    %cst_10 = arith.constant dense<0xFF800000> : vector<16xf32>
    %21 = vector.multi_reduction <maximumf>, %20, %cst_10 [1] : vector<16x256xf32> to vector<16xf32>
    %22 = vector.shape_cast %21 : vector<16xf32> to vector<16x1xf32>
    %23 = vector.broadcast %22 : vector<16x1xf32> to vector<16x256xf32>
    %24 = arith.cmpf oeq, %20, %23 : vector<16x256xf32>
    %cst_11 = arith.constant 0xFF800000 : f32
    %25 = vector.broadcast %cst_11 : f32 to vector<16x256xf32>
    %26 = arith.select %24, %25, %20 : vector<16x256xi1>, vector<16x256xf32>
    %c3_i32 = arith.constant 3 : i32
    %cst_12 = arith.constant dense<0xFF800000> : vector<16xf32>
    %27 = vector.multi_reduction <maximumf>, %26, %cst_12 [1] : vector<16x256xf32> to vector<16xf32>
    %28 = vector.shape_cast %27 : vector<16xf32> to vector<16x1xf32>
    %29 = vector.broadcast %28 : vector<16x1xf32> to vector<16x256xf32>
    %30 = arith.cmpf oeq, %26, %29 : vector<16x256xf32>
    %cst_13 = arith.constant 0xFF800000 : f32
    %31 = vector.broadcast %cst_13 : f32 to vector<16x256xf32>
    %32 = arith.select %30, %31, %26 : vector<16x256xi1>, vector<16x256xf32>
    %c4_i32 = arith.constant 4 : i32
    %cst_14 = arith.constant dense<0xFF800000> : vector<16xf32>
    %33 = vector.multi_reduction <maximumf>, %32, %cst_14 [1] : vector<16x256xf32> to vector<16xf32>
    %34 = vector.shape_cast %33 : vector<16xf32> to vector<16x1xf32>
    %35 = vector.broadcast %34 : vector<16x1xf32> to vector<16x256xf32>
    %36 = arith.cmpf oeq, %32, %35 : vector<16x256xf32>
    %cst_15 = arith.constant 0xFF800000 : f32
    %37 = vector.broadcast %cst_15 : f32 to vector<16x256xf32>
    %38 = arith.select %36, %37, %32 : vector<16x256xi1>, vector<16x256xf32>
    %c5_i32 = arith.constant 5 : i32
    %cst_16 = arith.constant dense<0xFF800000> : vector<16xf32>
    %39 = vector.multi_reduction <maximumf>, %38, %cst_16 [1] : vector<16x256xf32> to vector<16xf32>
    %40 = vector.shape_cast %39 : vector<16xf32> to vector<16x1xf32>
    %41 = vector.broadcast %40 : vector<16x1xf32> to vector<16x256xf32>
    %42 = arith.cmpf oeq, %38, %41 : vector<16x256xf32>
    %cst_17 = arith.constant 0xFF800000 : f32
    %43 = vector.broadcast %cst_17 : f32 to vector<16x256xf32>
    %44 = arith.select %42, %43, %38 : vector<16x256xi1>, vector<16x256xf32>
    %c6_i32 = arith.constant 6 : i32
    %cst_18 = arith.constant dense<0xFF800000> : vector<16xf32>
    %45 = vector.multi_reduction <maximumf>, %44, %cst_18 [1] : vector<16x256xf32> to vector<16xf32>
    %46 = vector.shape_cast %45 : vector<16xf32> to vector<16x1xf32>
    %47 = vector.broadcast %46 : vector<16x1xf32> to vector<16x256xf32>
    %48 = arith.cmpf oeq, %44, %47 : vector<16x256xf32>
    %cst_19 = arith.constant 0xFF800000 : f32
    %49 = vector.broadcast %cst_19 : f32 to vector<16x256xf32>
    %50 = arith.select %48, %49, %44 : vector<16x256xi1>, vector<16x256xf32>
    %cst_20 = arith.constant dense<0xFF800000> : vector<16xf32>
    %51 = vector.multi_reduction <maximumf>, %50, %cst_20 [1] : vector<16x256xf32> to vector<16xf32>
    %52 = vector.shape_cast %51 : vector<16xf32> to vector<16x1xf32>
    %53 = vector.broadcast %52 : vector<16x1xf32> to vector<16x256xf32>
    %54 = arith.cmpf oge, %8, %53 : vector<16x256xf32>
    %cst_21 = arith.constant 0.000000e+00 : f32
    %55 = vector.broadcast %cst_21 : f32 to vector<16x256xf32>
    %56 = arith.select %54, %8, %55 : vector<16x256xi1>, vector<16x256xf32>
    %c0_22 = arith.constant 0 : index
    %c0_23 = arith.constant 0 : index
    %57 = vector.load %arg5[%c0_22, %c0_23] : memref<16x256xf32, #tpu.memory_space<vmem>>, vector<16x256xf32>
    tpu.vector_store %arg5[%c0_22, %c0_23], %56 {strides = array<i32>} : memref<16x256xf32, #tpu.memory_space<vmem>>, vector<16x256xf32>,
    %58 = arith.truncf %56 : vector<16x256xf32> to vector<16x256xbf16>
    %c0_24 = arith.constant 0 : index
    %c0_25 = arith.constant 0 : index
    %59 = vector.load %arg4[%c0_24, %c0_25] : memref<256x128xbf16, #tpu.memory_space<vmem>>, vector<256x128xbf16>
    %cst_26 = arith.constant dense<0.000000e+00> : vector<16x128xf32>
    %60 = tpu.matmul %58, %59, %cst_26 {dimension_numbers = #tpu.dot_dimension_numbers<[1], [0], [0], [1], [0, 0, 1, 1], [], []>} : vector<16x256xbf16>, vector<256x128xbf16>, vector<16x128xf32> -> vector<16x128xf32>
    %c0_27 = arith.constant 0 : index
    %c0_28 = arith.constant 0 : index
    %61 = vector.load %arg6[%c0_27, %c0_28] : memref<16x128xf32, #tpu.memory_space<vmem>>, vector<16x128xf32>
    tpu.vector_store %arg6[%c0_27, %c0_28], %60 {strides = array<i32>} : memref<16x128xf32, #tpu.memory_space<vmem>>, vector<16x128xf32>,
    return
  }
  func.func @transform_0(%arg0: i32) -> (i32, i32) {
    %c0_i32 = arith.constant 0 : i32
    %c0_i32_0 = arith.constant 0 : i32
    return %arg0, %c0_i32 : i32, i32
  }
  func.func @transform_1(%arg0: i32) -> (i32, i32) {
    %c0_i32 = arith.constant 0 : i32
    %c0_i32_0 = arith.constant 0 : i32
    %c0_i32_1 = arith.constant 0 : i32
    return %c0_i32, %c0_i32_0 : i32, i32
  }
  func.func @transform_2(%arg0: i32) -> (i32, i32) {
    %c0_i32 = arith.constant 0 : i32
    %c0_i32_0 = arith.constant 0 : i32
    %c0_i32_1 = arith.constant 0 : i32
    return %c0_i32, %c0_i32_0 : i32, i32
  }
  func.func @transform_3(%arg0: i32) -> (i32, i32) {
    %c0_i32 = arith.constant 0 : i32
    %c0_i32_0 = arith.constant 0 : i32
    %c0_i32_1 = arith.constant 0 : i32
    return %c0_i32, %c0_i32_0 : i32, i32
  }
  func.func @transform_4(%arg0: i32) -> (i32, i32) {
    %c0_i32 = arith.constant 0 : i32
    %c0_i32_0 = arith.constant 0 : i32
    return %arg0, %c0_i32 : i32, i32
  }
  func.func @transform_5(%arg0: i32) -> (i32, i32) {
    %c0_i32 = arith.constant 0 : i32
    %c0_i32_0 = arith.constant 0 : i32
    return %arg0, %c0_i32 : i32, i32
  }
}

module attributes {stable_mosaic.version = 11 : i64} {
  func.func @_sae_kernel(%arg0: i32, %arg1: memref<16x128xf32, #tpu.memory_space<vmem>>, %arg2: memref<128x256xbf16, #tpu.memory_space<vmem>>, %arg3: memref<1x256xf32, #tpu.memory_space<vmem>>, %arg4: memref<256x128xbf16, #tpu.memory_space<vmem>>, %arg5: memref<16x256xf32, #tpu.memory_space<vmem>>, %arg6: memref<16x128xf32, #tpu.memory_space<vmem>>) attributes {dimension_semantics = [#tpu.dimension_semantics<parallel>], iteration_bounds = array<i64: 2>, scalar_prefetch = 0 : i64, scratch_operands = 0 : i64, tpu.core_type = #tpu.core_type<tc>, window_params = [{transform_indices = @transform_0, window_bounds = array<i64: 16, 128>}, {pipeline_mode = #tpu.pipeline_mode<synchronous>, transform_indices = @transform_1, window_bounds = array<i64: 128, 256>}, {pipeline_mode = #tpu.pipeline_mode<synchronous>, transform_indices = @transform_2, window_bounds = array<i64: 1, 256>}, {pipeline_mode = #tpu.pipeline_mode<synchronous>, transform_indices = @transform_3, window_bounds = array<i64: 256, 128>}, {transform_indices = @transform_4, window_bounds = array<i64: 16, 256>}, {transform_indices = @transform_5, window_bounds = array<i64: 16, 128>}]} {
    %c0 = arith.constant 0 : index
    %c0_0 = arith.constant 0 : index
    %0 = vector.load %arg1[%c0, %c0_0] : memref<16x128xf32, #tpu.memory_space<vmem>>, vector<16x128xf32>
    %1 = arith.truncf %0 : vector<16x128xf32> to vector<16x128xbf16>
    %c0_1 = arith.constant 0 : index
    %c0_2 = arith.constant 0 : index
    %2 = vector.load %arg2[%c0_1, %c0_2] : memref<128x256xbf16, #tpu.memory_space<vmem>>, vector<128x256xbf16>
    %cst = arith.constant dense<0.000000e+00> : vector<16x256xf32>
    %3 = tpu.matmul %1, %2, %cst {dimension_numbers = #tpu.dot_dimension_numbers<[1], [0], [0], [1], [0, 0, 1, 1], [], []>} : vector<16x128xbf16>, vector<128x256xbf16>, vector<16x256xf32> -> vector<16x256xf32>
    %c0_3 = arith.constant 0 : index
    %c0_4 = arith.constant 0 : index
    %4 = vector.load %arg3[%c0_3, %c0_4] : memref<1x256xf32, #tpu.memory_space<vmem>>, vector<1x256xf32>
    %5 = vector.broadcast %4 : vector<1x256xf32> to vector<16x256xf32>
    %6 = arith.addf %3, %5 : vector<16x256xf32>
    %cst_5 = arith.constant 0.000000e+00 : f32
    %7 = vector.broadcast %cst_5 : f32 to vector<16x256xf32>
    %8 = arith.maximumf %6, %7 : vector<16x256xf32>
    %c0_i32 = arith.constant 0 : i32
    %cst_6 = arith.constant dense<0xFF800000> : vector<16xf32>
    %9 = vector.multi_reduction <maximumf>, %8, %cst_6 [1] : vector<16x256xf32> to vector<16xf32>
    %10 = vector.shape_cast %9 : vector<16xf32> to vector<16x1xf32>
    %11 = vector.broadcast %10 : vector<16x1xf32> to vector<16x256xf32>
    %12 = arith.cmpf oeq, %8, %11 : vector<16x256xf32>
    %cst_7 = arith.constant 0xFF800000 : f32
    %13 = vector.broadcast %cst_7 : f32 to vector<16x256xf32>
    %14 = arith.select %12, %13, %8 : vector<16x256xi1>, vector<16x256xf32>
    %c1_i32 = arith.constant 1 : i32
    %cst_8 = arith.constant dense<0xFF800000> : vector<16xf32>
    %15 = vector.multi_reduction <maximumf>, %14, %cst_8 [1] : vector<16x256xf32> to vector<16xf32>
    %16 = vector.shape_cast %15 : vector<16xf32> to vector<16x1xf32>
    %17 = vector.broadcast %16 : vector<16x1xf32> to vector<16x256xf32>
    %18 = arith.cmpf oeq, %14, %17 : vector<16x256xf32>
    %cst_9 = arith.constant 0xFF800000 : f32
    %19 = vector.broadcast %cst_9 : f32 to vector<16x256xf32>
    %20 = arith.select %18, %19, %14 : vector<16x256xi1>, vector<16x256xf32>
    %c2_i32 = arith.constant 2 : i32
    %cst_10 = arith.constant dense<0xFF800000> : vector<16xf32>
    %21 = vector.multi_reduction <maximumf>, %20, %cst_10 [1] : vector<16x256xf32> to vector<16xf32>
    %22 = vector.shape_cast %21 : vector<16xf32> to vector<16x1xf32>
    %23 = vector.broadcast %22 : vector<16x1xf32> to vector<16x256xf32>
    %24 = arith.cmpf oeq, %20, %23 : vector<16x256xf32>
    %cst_11 = arith.constant 0xFF800000 : f32
    %25 = vector.broadcast %cst_11 : f32 to vector<16x256xf32>
    %26 = arith.select %24, %25, %20 : vector<16x256xi1>, vector<16x256xf32>
    %c3_i32 = arith.constant 3 : i32
    %cst_12 = arith.constant dense<0xFF800000> : vector<16xf32>
    %27 = vector.multi_reduction <maximumf>, %26, %cst_12 [1] : vector<16x256xf32> to vector<16xf32>
    %28 = vector.shape_cast %27 : vector<16xf32> to vector<16x1xf32>
    %29 = vector.broadcast %28 : vector<16x1xf32> to vector<16x256xf32>
    %30 = arith.cmpf oeq, %26, %29 : vector<16x256xf32>
    %cst_13 = arith.constant 0xFF800000 : f32
    %31 = vector.broadcast %cst_13 : f32 to vector<16x256xf32>
    %32 = arith.select %30, %31, %26 : vector<16x256xi1>, vector<16x256xf32>
    %c4_i32 = arith.constant 4 : i32
    %cst_14 = arith.constant dense<0xFF800000> : vector<16xf32>
    %33 = vector.multi_reduction <maximumf>, %32, %cst_14 [1] : vector<16x256xf32> to vector<16xf32>
    %34 = vector.shape_cast %33 : vector<16xf32> to vector<16x1xf32>
    %35 = vector.broadcast %34 : vector<16x1xf32> to vector<16x256xf32>
    %36 = arith.cmpf oeq, %32, %35 : vector<16x256xf32>
    %cst_15 = arith.constant 0xFF800000 : f32
    %37 = vector.broadcast %cst_15 : f32 to vector<16x256xf32>
    %38 = arith.select %36, %37, %32 : vector<16x256xi1>, vector<16x256xf32>
    %c5_i32 = arith.constant 5 : i32
    %cst_16 = arith.constant dense<0xFF800000> : vector<16xf32>
    %39 = vector.multi_reduction <maximumf>, %38, %cst_16 [1] : vector<16x256xf32> to vector<16xf32>
    %40 = vector.shape_cast %39 : vector<16xf32> to vector<16x1xf32>
    %41 = vector.broadcast %40 : vector<16x1xf32> to vector<16x256xf32>
    %42 = arith.cmpf oeq, %38, %41 : vector<16x256xf32>
    %cst_17 = arith.constant 0xFF800000 : f32
    %43 = vector.broadcast %cst_17 : f32 to vector<16x256xf32>
    %44 = arith.select %42, %43, %38 : vector<16x256xi1>, vector<16x256xf32>
    %c6_i32 = arith.constant 6 : i32
    %cst_18 = arith.constant dense<0xFF800000> : vector<16xf32>
    %45 = vector.multi_reduction <maximumf>, %44, %cst_18 [1] : vector<16x256xf32> to vector<16xf32>
    %46 = vector.shape_cast %45 : vector<16xf32> to vector<16x1xf32>
    %47 = vector.broadcast %46 : vector<16x1xf32> to vector<16x256xf32>
    %48 = arith.cmpf oeq, %44, %47 : vector<16x256xf32>
    %cst_19 = arith.constant 0xFF800000 : f32
    %49 = vector.broadcast %cst_19 : f32 to vector<16x256xf32>
    %50 = arith.select %48, %49, %44 : vector<16x256xi1>, vector<16x256xf32>
    %cst_20 = arith.constant dense<0xFF800000> : vector<16xf32>
    %51 = vector.multi_reduction <maximumf>, %50, %cst_20 [1] : vector<16x256xf32> to vector<16xf32>
    %52 = vector.shape_cast %51 : vector<16xf32> to vector<16x1xf32>
    %53 = vector.broadcast %52 : vector<16x1xf32> to vector<16x256xf32>
    %54 = arith.cmpf oge, %8, %53 : vector<16x256xf32>
    %cst_21 = arith.constant 0.000000e+00 : f32
    %55 = vector.broadcast %cst_21 : f32 to vector<16x256xf32>
    %56 = arith.select %54, %8, %55 : vector<16x256xi1>, vector<16x256xf32>
    %c0_22 = arith.constant 0 : index
    %c0_23 = arith.constant 0 : index
    %57 = vector.load %arg5[%c0_22, %c0_23] : memref<16x256xf32, #tpu.memory_space<vmem>>, vector<16x256xf32>
    tpu.vector_store %arg5[%c0_22, %c0_23], %56 {strides = array<i32>} : memref<16x256xf32, #tpu.memory_space<vmem>>, vector<16x256xf32>,
    %58 = arith.truncf %56 : vector<16x256xf32> to vector<16x256xbf16>
    %c0_24 = arith.constant 0 : index
    %c0_25 = arith.constant 0 : index
    %59 = vector.load %arg4[%c0_24, %c0_25] : memref<256x128xbf16, #tpu.memory_space<vmem>>, vector<256x128xbf16>
    %cst_26 = arith.constant dense<0.000000e+00> : vector<16x128xf32>
    %60 = tpu.matmul %58, %59, %cst_26 {dimension_numbers = #tpu.dot_dimension_numbers<[1], [0], [0], [1], [0, 0, 1, 1], [], []>} : vector<16x256xbf16>, vector<256x128xbf16>, vector<16x128xf32> -> vector<16x128xf32>
    %c0_27 = arith.constant 0 : index
    %c0_28 = arith.constant 0 : index
    %61 = vector.load %arg6[%c0_27, %c0_28] : memref<16x128xf32, #tpu.memory_space<vmem>>, vector<16x128xf32>
    tpu.vector_store %arg6[%c0_27, %c0_28], %60 {strides = array<i32>} : memref<16x128xf32, #tpu.memory_space<vmem>>, vector<16x128xf32>,
    return
  }
  func.func @transform_0(%arg0: i32) -> (i32, i32) {
    %c0_i32 = arith.constant 0 : i32
    %c0_i32_0 = arith.constant 0 : i32
    return %arg0, %c0_i32 : i32, i32
  }
  func.func @transform_1(%arg0: i32) -> (i32, i32) {
    %c0_i32 = arith.constant 0 : i32
    %c0_i32_0 = arith.constant 0 : i32
    %c0_i32_1 = arith.constant 0 : i32
    return %c0_i32, %c0_i32_0 : i32, i32
  }
  func.func @transform_2(%arg0: i32) -> (i32, i32) {
    %c0_i32 = arith.constant 0 : i32
    %c0_i32_0 = arith.constant 0 : i32
    %c0_i32_1 = arith.constant 0 : i32
    return %c0_i32, %c0_i32_0 : i32, i32
  }
  func.func @transform_3(%arg0: i32) -> (i32, i32) {
    %c0_i32 = arith.constant 0 : i32
    %c0_i32_0 = arith.constant 0 : i32
    %c0_i32_1 = arith.constant 0 : i32
    return %c0_i32, %c0_i32_0 : i32, i32
  }
  func.func @transform_4(%arg0: i32) -> (i32, i32) {
    %c0_i32 = arith.constant 0 : i32
    %c0_i32_0 = arith.constant 0 : i32
    return %arg0, %c0_i32 : i32, i32
  }
  func.func @transform_5(%arg0: i32) -> (i32, i32) {
    %c0_i32 = arith.constant 0 : i32
    %c0_i32_0 = arith.constant 0 : i32
    return %arg0, %c0_i32 : i32, i32
  }
}

</mosaic_0001>

<bundles_post_ra>
// kernel: tpu_custom_call.1
= control target key start
LH: loop header
LB: loop body
LE: loop exit
PB: predicated region body
PF: predicated region fallthrough
CT: control target
= control target key end

     0   :  { %11 = vsyncpa [#allocation3], 0  ;;  %s1656_s0 = inlined_call_operand.hbm [shape: f32[32,128], index: 0, kind: input, shape index: {}]   ;;  %s1657_s1 = inlined_call_operand.hbm [shape: bf16[128,256], index: 1, kind: input, shape index: {}]   ;;  %s1658_s2 = inlined_call_operand.vmem [shape: f32[1,256], index: 2, kind: input, shape index: {}]   ;;  %s1659_s3 = inlined_call_operand.hbm [shape: bf16[256,128], index: 3, kind: input, shape index: {}]   ;;  %s1660_s4 = inlined_call_operand.hbm [shape: f32[32,256], index: 4, kind: output, shape index: {0}]   ;;  %s1661_s5 = inlined_call_operand.hbm [shape: f32[32,128], index: 5, kind: output, shape index: {1}]  }
   0x1   :  { %13 = vsyncpa [#allocation3 + $0x1], 0 }
   0x2   :  { %14 = vsyncpa [#allocation6], 0 }
   0x3   :  { %15 = vsyncpa [#allocation4], 0 }
   0x4   :  { %17 = vsyncpa [#allocation4 + $0x1], 0 }
   0x5   :  { %18 = vsyncpa [#allocation10], 0 }
   0x6   :  { %20 = vsyncpa [#allocation10 + $0x1], 0  ;;  %s1336_s18 = smov 0   ;;  %s1338_s19 = smov 0  }
   0x7   :  { %s1340_s20 = smov 0   ;;  %s1342_s21 = smov 0  }
   0x8 LB: > { %s1357_s22 = sadd.s32 4294967295, %s1290_s21   ;;  %s894_s23 = sadd.s32 4294967294, %s1290_s21   ;;  %s1290_s21 = sphi %s1342_s21, %s1681_s21   ;;  %s1286_s20 = sphi %s1340_s20, %s1680_s20   ;;  %s1282_s19 = sphi %s1338_s19, %s1679_s19   ;;  %s1278_s18 = sphi %s1336_s18, %s1678_s18  }
   0x9   : > { %p46_p0 = scmp.ne.s32.totalorder %s1282_s19, %s1278_s18  ;;  %p1662_p1 = scmp.eq.s32.totalorder %s1357_s22, 0 }
   0xa   : > { %p139_p3 = scmp.eq.s32.totalorder %s894_s23, 1  ;;  %p895_p5 = scmp.ge.s32.totalorder %s1290_s21, 1 }
   0xb   : > { %p1366_p4 = por %p1662_p1, %p46_p0  ;;  %p172_p7 = scmp.lt.s32.totalorder %s1290_s21, 3 }
   0xc   : > { %p1371_p6 = por %p139_p3, %p46_p0  ;;  %s1292_s27 = smov [#allocation5]  }
   0xd   : > { %s1665_s24 = scalar_select %p1366_p4, 1, 0 }
   0xe   : > { %s1666_s25 = scalar_select %p1371_p6, 1, 0 }
   0xf   : > { %p1376_p8 = pnand %p895_p5, %p172_p7  ;;  %s184_s28 = sshll.u32 %s1292_s27, 4  ;;  %s1380_s28 = int_to_ptr.vmem [resolvable:$true] %s184_s28 }
  0x10   : > { %s1293_s30 = smov [#allocation7]   ;;  %s1102_s9 = scalar_lea.hbm %s1657_s1, 2048 }
  0x11   : > { %p995_p9 = pneg %p1376_p8  ;;  %s200_s6 = sshll.u32 %s1293_s30, 4  ;;  %s1391_s6 = int_to_ptr.vmem [resolvable:$true] %s200_s6 }
  0x12   : > { %p1103_p12 = scmp.ne.s32.totalorder %s1657_s1, %s1102_s9  ;;  %p1109_p5 = scmp.lt.u32.totalorder %s1102_s9, %s1657_s1 }
  0x13   : > { %p1387_p11 = pnand %p995_p9, %p1662_p1 }
  0x15   : > { %p1104_p13 = pneg %p1387_p11 }
  0x17   : > { %p1105_p0 = pnand %p1104_p13, %p1103_p12 }
  0x19   : > { %p1106_p3 = pneg %p1105_p0 }
  0x1b   : > { %p1111_p7 = pnand %p1109_p5, %p1106_p3 }
  0x1d   : > { %1114 = shalt.err (!%p1111_p7)
}
  0x1e   : > { %s1115_s14 = scalar_lea.vmem %s1380_s28, 2048  ;;  %p1123_p2 = scmp.lt.s32.totalorder %s1380_s28, %s1380_s28 }
  0x1f   : > { %p1116_p9 = scmp.ne.s32.totalorder %s1380_s28, %s1115_s14  ;;  %p1124_p12 = scmp.lt.s32.totalorder %s1115_s14, %s1115_s14 }
  0x21   : > { %p1118_p10 = pnand %p1116_p9, %p1104_p13  ;;  %p1125_p0 = por %p1124_p12, %p1123_p2 }
  0x23   : > { %p1119_p1 = pneg %p1118_p10 }
  0x25   : > { %p1126_p6 = pnand %p1125_p0, %p1119_p1 }
  0x27   : > { %1129 = shalt.err (!%p1126_p6)
}
  0x28   : > { %s1294_s15 = smov 128   ;;  %s1295_s16 = smov 8  }
  0x29   : > { %998 = dma.hbm_to_vmem [thread:$0]  (!%p1387_p11), %s1657_s1, 2048, %s1380_s28, [#allocation6], %s1294_s15, %s1294_s15, %s1295_s16  }
  0x2a   : > { %s1130_s7 = scalar_lea.hbm %s1659_s3, 2048 }
  0x2b   : > { %p1131_p1 = scmp.ne.s32.totalorder %s1659_s3, %s1130_s7  ;;  %p1137_p10 = scmp.lt.u32.totalorder %s1130_s7, %s1659_s3 }
  0x2d   : > { %p1133_p2 = pnand %p1131_p1, %p1104_p13 }
  0x2f   : > { %p1134_p6 = pneg %p1133_p2 }
  0x31   : > { %p1139_p3 = pnand %p1137_p10, %p1134_p6 }
  0x33   : > { %1142 = shalt.err (!%p1139_p3)
}
  0x34   : > { %s1143_s28 = scalar_lea.vmem %s1391_s6, 2048  ;;  %p1151_p12 = scmp.lt.s32.totalorder %s1391_s6, %s1391_s6 }
  0x35   : > { %p1144_p5 = scmp.ne.s32.totalorder %s1391_s6, %s1143_s28  ;;  %p1152_p0 = scmp.lt.s32.totalorder %s1143_s28, %s1143_s28 }
  0x37   : > { %p1146_p7 = pnand %p1144_p5, %p1104_p13  ;;  %p1153_p1 = por %p1152_p0, %p1151_p12 }
  0x39   : > { %p1147_p9 = pneg %p1146_p7 }
  0x3b   : > { %p1154_p2 = pnand %p1153_p1, %p1147_p9 }
  0x3d   : > { %1157 = shalt.err (!%p1154_p2)
}
  0x3e   : > { %s1296_s12 = smov 64   ;;  %s1297_s13 = smov 4  }
  0x3f   : > { %1001 = dma.hbm_to_vmem [thread:$0]  (!%p1387_p11), %s1659_s3, 2048, %s1391_s6, [#allocation6], %s1296_s12, %s1296_s12, %s1297_s13  }
  0x40   : > { %s1449_s23 = sadd.s32 1, %s1290_s21   ;;  %s33_s30 = sadd.s32 1, %s1286_s20 }
  0x41   : > { %s30_s27 = ssub.s32 %s1290_s21, %s1449_s23  ;;  %p40_p6 = scmp.ne.s32.totalorder %s1286_s20, %s1282_s19 }
  0x42   : > { %p31_p13 = scmp.eq.s32.totalorder %s30_s27, 0  ;;  %p41_p10 = scmp.eq.s32.totalorder %s1290_s21, 0 }
  0x43   : > { %p1669_p5 = scmp.eq.s32.totalorder %s1357_s22, 1  ;;  %p1015_p9 = scmp.lt.s32.totalorder %s1290_s21, 2 }
  0x44   : > { %s1458_s7 = scalar_select %p31_p13, %s1286_s20, %s33_s30  }
  0x45   : > { %p42_p3 = por %p41_p10, %p40_p6  ;;  %p1462_p7 = por %p1669_p5, %p40_p6 }
  0x46   : > { %s214_s29 = sand.u32 1, %s1286_s20   ;;  %s955_s6 = sshll.u32 %s1290_s21, 8 }
  0x47   : > { %s1670_s8 = scalar_select %p1462_p7, 1, 0 }
  0x48   : > { %s899_s9 = sshll.u32 %s214_s29, 4  ;;  %s1472_s28 = scalar_lea.hbm %s1656_s0, %s955_s6 }
  0x49   : > { %s218_s12 = scalar_lea.vmem [#allocation2], %s899_s9  ;;  %p1476_p11 = pnand %p1015_p9, %p42_p3 }
  0x4a   : > { %s225_s13 = sshll.u32 %s218_s12, 4  ;;  %s1480_s17 = scalar_lea.sflag [#allocation3], %s214_s29  ;;  %s1474_s13 = int_to_ptr.vmem [resolvable:$true] %s225_s13 }
  0x4b   : > { %s1158_s27 = scalar_lea.hbm %s1472_s28, 256  ;;  %p1160_p0 = pneg %p1476_p11 }
  0x4c   : > { %p1159_p12 = scmp.ne.s32.totalorder %s1472_s28, %s1158_s27  ;;  %s1163_s6 = scalar_lea.hbm %s1656_s0, 512 }
  0x4d   : > { %p1164_p13 = scmp.lt.u32.totalorder %s1472_s28, %s1656_s0  ;;  %p1165_p6 = scmp.lt.u32.totalorder %s1163_s6, %s1158_s27 }
  0x4e   : > { %p1161_p1 = pnand %p1160_p0, %p1159_p12  ;;  %p1167_p3 = scmp.lt.u32.totalorder %s1158_s27, %s1472_s28 }
  0x4f   : > { %p1166_p10 = por %p1165_p6, %p1164_p13 }
  0x50   : > { %p1162_p2 = pneg %p1161_p1 }
  0x51   : > { %p1168_p5 = por %p1167_p3, %p1166_p10 }
  0x53   : > { %p1169_p9 = pnand %p1168_p5, %p1162_p2 }
  0x55   : > { %1172 = shalt.err (!%p1169_p9)
}
  0x56   : > { %s1173_s29 = scalar_lea.vmem %s1474_s13, 256  ;;  %s1298_s12 = smov [#allocation2]  }
  0x57   : > { %p1174_p12 = scmp.ne.s32.totalorder %s1474_s13, %s1173_s29  ;;  %s1178_s30 = sshll.u32 %s1298_s12, 4  ;;  %s1179_s30 = int_to_ptr.vmem [resolvable:$false] %s1178_s30 }
  0x58   : > { %s1180_s9 = scalar_lea.vmem %s1179_s30, 512  ;;  %p1181_p4 = scmp.lt.s32.totalorder %s1474_s13, %s1179_s30 }
  0x59   : > { %p1176_p1 = pnand %p1174_p12, %p1160_p0  ;;  %p1182_p13 = scmp.lt.s32.totalorder %s1180_s9, %s1173_s29 }
  0x5b   : > { %p1177_p7 = pneg %p1176_p1  ;;  %p1183_p6 = por %p1182_p13, %p1181_p4 }
  0x5d   : > { %p1184_p10 = pnand %p1183_p6, %p1177_p7 }
  0x5f   : > { %1187 = shalt.err (!%p1184_p10)
}
  0x60   : > { %1005 = dma.hbm_to_vmem [thread:$0]  (!%p1476_p11), %s1472_s28, 256, %s1474_s13, %s1480_s17, %s1294_s15, %s1294_s15, %s1295_s16  }
  0x61   : > { %237 = sbr.rel (%p1376_p8) target bundleno = 1765 (0x6e5), region = 36  ;;  %s1514_s27 = sand.u32 (!%p1376_p8), 1, %s1282_s19  }
  0x62   : > { %s903_s6 = sshll.u32 (!%p1376_p8), %s1514_s27, 4  ;;  %s240_s10 = scalar_lea.sflag (!%p1376_p8), [#allocation3], %s1514_s27 }
  0x63   : > { %s1520_s14 = scalar_lea.vmem (!%p1376_p8), [#allocation2], %s903_s6  ;;  %p1672_p4 = scmp.ne.s32.totalorder (!%p1376_p8), %s1665_s24, 0 }
  0x68   : > { %1261 = dma.done.wait (%p1672_p4), %s240_s10, 256  }
  0x69   : > { %1263 = vsyncadd (%p1672_p4), %s240_s10, 4294967040  ;;  %p1673_p7 = scmp.eq.s32.totalorder %s1357_s22, 0 }
  0x6b   : > { %1265 = dma.done.wait (%p1673_p7), [#allocation6], 4096   ;;  %p1674_p8 = pmov %p1673_p7 }
  0x6c   : > { %v1299_v0 = vmov 0   ;;  %v1062_v1 = vld [vmem:[#allocation5 + $0x4] ss:$8 sps:$4 sm:$0xff]   ;;  %v1064_v2 = vld [vmem:[#allocation5] ss:$8 sps:$4 sm:$0xff]   ;;  %v308_v20 = vlaneseq  ;;  %s906_s15 = sshll.u32 %s1514_s27, 5 }
  0x6d   : > { %1267 = vsyncadd (%p1674_p8), [#allocation6], 4294963200  ;;  %430 = vmatprep.mubr.bf16.mxu0 %v1299_v0  ;;  %398 = vmatprep.subr.bf16.mxu0 %v1062_v1  ;;  %v1065_v3 = vld [vmem:[#allocation5 + $0x14] ss:$8 sps:$4 sm:$0xff]   ;;  %v1067_v4 = vld [vmem:[#allocation5 + $0x10] ss:$8 sps:$4 sm:$0xff]  }
  0x6e   : > { %399 = vmatpush1.bf16.msra.mxu0 %v1064_v2  ;;  %v1068_v5 = vld [vmem:[#allocation5 + $0x24] ss:$8 sps:$4 sm:$0xff]   ;;  %v1070_v6 = vld [vmem:[#allocation5 + $0x20] ss:$8 sps:$4 sm:$0xff]   ;;  %v1071_v7 = vld [vmem:[#allocation5 + $0x34] ss:$8 sps:$4 sm:$0xff]  }
  0x6f   : > { %400 = vmatprep.subr.bf16.mxu0 %v1065_v3  ;;  %v1073_v8 = vld [vmem:[#allocation5 + $0x30] ss:$8 sps:$4 sm:$0xff]   ;;  %v1074_v9 = vld [vmem:[#allocation5 + $0x44] ss:$8 sps:$4 sm:$0xff]   ;;  %v1076_v10 = vld [vmem:[#allocation5 + $0x40] ss:$8 sps:$4 sm:$0xff]  }
  0x70   : > { %v1077_v11 = vld [vmem:[#allocation5 + $0x54] ss:$8 sps:$4 sm:$0xff]   ;;  %v1079_v12 = vld [vmem:[#allocation5 + $0x50] ss:$8 sps:$4 sm:$0xff]   ;;  %v1080_v13 = vld [vmem:[#allocation5 + $0x64] ss:$8 sps:$4 sm:$0xff]  }
  0x71   : > { %v1082_v14 = vld [vmem:[#allocation5 + $0x60] ss:$8 sps:$4 sm:$0xff]   ;;  %v1083_v15 = vld [vmem:[#allocation5 + $0x74] ss:$8 sps:$4 sm:$0xff]   ;;  %v1085_v16 = vld [vmem:[#allocation5 + $0x70] ss:$8 sps:$4 sm:$0xff]  }
  0x72   : > { %401 = vmatpush1.bf16.msra.mxu0 %v1067_v4  ;;  %v287_v17 = vld [vmem:[%s1520_s14] sm:$0xff]  ;;  %v288_v18 = vld [vmem:[%s1520_s14 + $0x8] sm:$0xff]  ;;  %v309_v21 = vshrl.u32 %v308_v20, 7  ;;  %s275_s16 = scalar_lea.vmem [#allocation8], %s906_s15  ;;  %s957_s13 = sshll.u32 %s1357_s22, 9 }
  0x73   : > { %402 = vmatprep.subr.bf16.mxu0 %v1068_v5  ;;  %v289_v19 = vpack.c.bf16 %v288_v18, %v287_v17  ;;  %v306_v23 = vld [vmem:[%s1658_s2] sm:$0x3]  ;;  %s754_s28 = sshll.u32 %s275_s16, 4  ;;  %s1578_s29 = scalar_lea.hbm %s1660_s4, %s957_s13  ;;  %s1572_s28 = int_to_ptr.vmem [resolvable:$true] %s754_s28 }
  0x74   : > { %v310_v22 = vsub.s32 0, %v309_v21  ;;  %v314_v24 = vsub.s32 1, %v309_v21  ;;  %s735_s12 = scalar_lea.sflag [#allocation4], %s1514_s27  ;;  %s1188_s30 = scalar_lea.vmem %s1572_s28, 512 }
  0x75   : > { %p1189_p11 = scmp.ne.s32.totalorder %s1572_s28, %s1188_s30  ;;  %p1675_p0 = scmp.ne.s32.totalorder %s1670_s8, 0 }
  0x76   : > { %403 = vmatpush1.bf16.msra.mxu0 %v1070_v6  ;;  %v311_v25 = vrot.slane %v306_v23, %v310_v22  ;;  %v315_v26 = vrot.slane %v306_v23, %v314_v24  ;;  %s1300_s9 = smov [#allocation8]  }
  0x77   : > { %404 = vmatprep.subr.bf16.mxu0 %v1071_v7  ;;  %p1190_p2 = pnand %p1189_p11, %p1675_p0  ;;  %s1192_s10 = sshll.u32 %s1300_s9, 4  ;;  %s1193_s10 = int_to_ptr.vmem [resolvable:$false] %s1192_s10 }
  0x78   : > { %s1194_s14 = scalar_lea.vmem %s1193_s10, 1024  ;;  %p1195_p5 = scmp.lt.s32.totalorder %s1572_s28, %s1193_s10 }
  0x79   : > { %p1191_p3 = pneg %p1190_p2  ;;  %p1196_p9 = scmp.lt.s32.totalorder %s1194_s14, %s1188_s30 }
  0x7a   : > { %405 = vmatpush1.bf16.msra.mxu0 %v1073_v8 }
  0x7b   : > { %406 = vmatprep.subr.bf16.mxu0 %v1074_v9  ;;  %p1197_p12 = por %p1196_p9, %p1195_p5 }
  0x7d   : > { %p1198_p1 = pnand %p1197_p12, %p1191_p3 }
  0x7e   : > { %407 = vmatpush1.bf16.msra.mxu0 %v1076_v10 }
  0x7f   : > { %408 = vmatprep.subr.bf16.mxu0 %v1077_v11 }
  0x82   : > { %409 = vmatpush1.bf16.msra.mxu0 %v1079_v12 }
  0x83   : > { %410 = vmatprep.subr.bf16.mxu0 %v1080_v13 }
  0x86   : > { %411 = vmatpush1.bf16.msra.mxu0 %v1082_v14 }
  0x87   : > { %412 = vmatprep.subr.bf16.mxu0 %v1083_v15 }
  0x8a   : > { %413 = vmatpush1.bf16.msra.mxu0 %v1085_v16 }
  0x8d   : > { %431 = vmatmul.mubr.bf16.vlgmr.msra.gmra.mrb[0].mxu0 %v289_v19 }
 0x160   : > { %v432_v27 = vpop.f32.mrb[0].mxu0 }
 0x161   : > { %v433_v28 = vadd.f32 %v432_v27, %v311_v25  ;;  %v434_v29 = vpop.f32.mrb[1].mxu0  ;;  %v1088_v27 = vld [vmem:[#allocation7 + $0x48] sm:$0xff]  }
 0x162   : > { %v435_v30 = vadd.f32 %v434_v29, %v315_v26  ;;  %v436_v31 = vpop.f32.mrb[2].mxu0  ;;  %v1090_v29 = vld [vmem:[#allocation7 + $0x50] sm:$0xff]  }
 0x163   : > { %v1535_v32 = vmax.f32 %v433_v28, 0.0  ;;  %v437_v33 = vadd.f32 %v436_v31, %v311_v25  ;;  %v438_v34 = vpop.f32.mrb[3].mxu0  ;;  %v1086_v25 = vld [vmem:[#allocation7 + $0x40] sm:$0xff]   ;;  %v1089_v28 = vld [vmem:[#allocation7 + $0x8] sm:$0xff]   ;;  %v1092_v31 = vld [vmem:[#allocation7 + $0x58] sm:$0xff]  }
 0x164   : > { %v1537_v35 = vmax.f32 %v435_v30, 0.0  ;;  %v439_v36 = vadd.f32 %v438_v34, %v315_v26  ;;  %v1087_v26 = vld [vmem:[#allocation7] sm:$0xff]   ;;  %959 = vmatprep.subr.bf16.mxu1 %v1086_v25  ;;  %v1091_v30 = vld [vmem:[#allocation7 + $0x10] sm:$0xff]  }
 0x165   : > { %v1539_v37 = vmax.f32 %v437_v33, 0.0  ;;  %960 = vmatpush3.bf16.msra.mxu1 %v1087_v26  ;;  %v1093_v33 = vld [vmem:[#allocation7 + $0x18] sm:$0xff]   ;;  %v1094_v34 = vld [vmem:[#allocation7 + $0x60] sm:$0xff]  }
 0x166   : > { %v1541_v38 = vmax.f32 %v439_v36, 0.0  ;;  %v445_v39 = vmax.f32 %v1535_v32, %v1537_v35  ;;  %961 = vmatprep.subr.bf16.mxu1 %v1088_v27  ;;  %v1095_v36 = vld [vmem:[#allocation7 + $0x20] sm:$0xff]  }
 0x168   : > { %446 = vmax.xlane.f32.xlu0 %v445_v39  ;;  %v448_v40 = vmax.f32 %v1539_v37, %v1541_v38  ;;  %v1096_v39 = vld [vmem:[#allocation7 + $0x68] sm:$0xff]  }
 0x169   : > { %962 = vmatpush3.bf16.msra.mxu1 %v1089_v28 }
 0x16a   : > { %963 = vmatprep.subr.bf16.mxu1 %v1090_v29 }
 0x16c   : > { %449 = vmax.xlane.f32.xlu0 %v448_v40  ;;  %v1097_v40 = vld [vmem:[#allocation7 + $0x28] sm:$0xff]  }
 0x16d   : > { %964 = vmatpush3.bf16.msra.mxu1 %v1091_v30 }
 0x16e   : > { %965 = vmatprep.subr.bf16.mxu1 %v1092_v31 }
 0x171   : > { %966 = vmatpush3.bf16.msra.mxu1 %v1093_v33 }
 0x172   : > { %967 = vmatprep.subr.bf16.mxu1 %v1094_v34 }
 0x175   : > { %968 = vmatpush3.bf16.msra.mxu1 %v1095_v36 }
 0x176   : > { %969 = vmatprep.subr.bf16.mxu1 %v1096_v39 }
 0x179   : > { %970 = vmatpush3.bf16.msra.mxu1 %v1097_v40 }
 0x1f5   : > { %v447_v41 = vpop.xlane.xlu0 %446 }
 0x1f6   : > { %vm451_vm0 = vcmp.eq.f32.partialorder %v1535_v32, %v447_v41  ;;  %vm452_vm1 = vcmp.eq.f32.partialorder %v1537_v35, %v447_v41  ;;  %v1098_v41 = vld [vmem:[#allocation7 + $0x70] sm:$0xff]  }
 0x1f7   : > { %v455_v42 = vsel %vm451_vm0, -inf, %v1535_v32  ;;  %v456_v43 = vsel %vm452_vm1, -inf, %v1537_v35  ;;  %971 = vmatprep.subr.bf16.mxu1 %v1098_v41 }
 0x1f8   : > { %v459_v44 = vmax.f32 %v455_v42, %v456_v43 }
 0x1f9   : > { %v450_v45 = vpop.xlane.xlu0 %449 }
 0x1fa   : > { %vm453_vm2 = vcmp.eq.f32.partialorder %v1539_v37, %v450_v45  ;;  %vm454_vm3 = vcmp.eq.f32.partialorder %v1541_v38, %v450_v45  ;;  %460 = vmax.xlane.f32.xlu1 %v459_v44 }
 0x1fb   : > { %v457_v46 = vsel %vm453_vm2, -inf, %v1539_v37  ;;  %v458_v47 = vsel %vm454_vm3, -inf, %v1541_v38 }
 0x1fc   : > { %v462_v48 = vmax.f32 %v457_v46, %v458_v47 }
 0x1fe   : > { %463 = vmax.xlane.f32.xlu1 %v462_v48 }
 0x287   : > { %v461_v49 = vpop.xlane.xlu1 %460 }
 0x288   : > { %vm465_vm4 = vcmp.eq.f32.partialorder %v455_v42, %v461_v49  ;;  %vm466_vm5 = vcmp.eq.f32.partialorder %v456_v43, %v461_v49 }
 0x289   : > { %v469_v50 = vsel %vm465_vm4, -inf, %v455_v42  ;;  %v470_v51 = vsel %vm466_vm5, -inf, %v456_v43 }
 0x28a   : > { %v473_v52 = vmax.f32 %v469_v50, %v470_v51 }
 0x28b   : > { %v464_v53 = vpop.xlane.xlu1 %463 }
 0x28c   : > { %vm467_vm6 = vcmp.eq.f32.partialorder %v457_v46, %v464_v53  ;;  %vm468_vm7 = vcmp.eq.f32.partialorder %v458_v47, %v464_v53  ;;  %474 = vmax.xlane.f32.xlu0 %v473_v52  ;;  %v1101_v52 = vld [vmem:[#allocation7 + $0x38] sm:$0xff]  }
 0x28d   : > { %v471_v54 = vsel %vm467_vm6, -inf, %v457_v46  ;;  %v472_v55 = vsel %vm468_vm7, -inf, %v458_v47 }
 0x28e   : > { %v476_v56 = vmax.f32 %v471_v54, %v472_v55 }
 0x290   : > { %477 = vmax.xlane.f32.xlu1 %v476_v56 }
 0x319   : > { %v475_v57 = vpop.xlane.xlu0 %474 }
 0x31a   : > { %vm479_vm8 = vcmp.eq.f32.partialorder %v469_v50, %v475_v57  ;;  %vm480_vm9 = vcmp.eq.f32.partialorder %v470_v51, %v475_v57 }
 0x31b   : > { %v483_v58 = vsel %vm479_vm8, -inf, %v469_v50  ;;  %v484_v59 = vsel %vm480_vm9, -inf, %v470_v51  ;;  %v1099_v50 = vld [vmem:[#allocation7 + $0x30] sm:$0xff]   ;;  %v1100_v51 = vld [vmem:[#allocation7 + $0x78] sm:$0xff]  }
 0x31c   : > { %v487_v60 = vmax.f32 %v483_v58, %v484_v59  ;;  %972 = vmatpush3.bf16.msra.mxu1 %v1099_v50 }
 0x31d   : > { %v478_v61 = vpop.xlane.xlu1 %477  ;;  %973 = vmatprep.subr.bf16.mxu1 %v1100_v51 }
 0x31e   : > { %vm481_vm10 = vcmp.eq.f32.partialorder %v471_v54, %v478_v61  ;;  %vm482_vm11 = vcmp.eq.f32.partialorder %v472_v55, %v478_v61  ;;  %488 = vmax.xlane.f32.xlu0 %v487_v60  ;;  %v944_v60 = vpack.c.bf16 %v1539_v37, %v1535_v32 }
 0x31f   : > { %v485_v62 = vsel %vm481_vm10, -inf, %v471_v54  ;;  %v486_v63 = vsel %vm482_vm11, -inf, %v472_v55 }
 0x320   : > { %v490_v0 = vmax.f32 %v485_v62, %v486_v63  ;;  %974 = vmatpush3.bf16.msra.mxu1 %v1101_v52 }
 0x322   : > { %491 = vmax.xlane.f32.xlu1 %v490_v0 }
 0x3ab   : > { %v489_v1 = vpop.xlane.xlu0 %488 }
 0x3ac   : > { %vm493_vm12 = vcmp.eq.f32.partialorder %v483_v58, %v489_v1  ;;  %vm494_vm13 = vcmp.eq.f32.partialorder %v484_v59, %v489_v1 }
 0x3ad   : > { %v497_v2 = vsel %vm493_vm12, -inf, %v483_v58  ;;  %v498_v3 = vsel %vm494_vm13, -inf, %v484_v59  ;;  %v941_v59 = vpack.c.bf16 %v1541_v38, %v1537_v35 }
 0x3ae   : > { %v501_v4 = vmax.f32 %v497_v2, %v498_v3 }
 0x3af   : > { %v492_v5 = vpop.xlane.xlu1 %491 }
 0x3b0   : > { %vm495_vm14 = vcmp.eq.f32.partialorder %v485_v62, %v492_v5  ;;  %vm496_vm15 = vcmp.eq.f32.partialorder %v486_v63, %v492_v5  ;;  %502 = vmax.xlane.f32.xlu0 %v501_v4 }
 0x3b1   : > { %v499_v6 = vsel %vm495_vm14, -inf, %v485_v62  ;;  %v500_v7 = vsel %vm496_vm15, -inf, %v486_v63 }
 0x3b2   : > { %v504_v8 = vmax.f32 %v499_v6, %v500_v7 }
 0x3b4   : > { %505 = vmax.xlane.f32.xlu1 %v504_v8 }
 0x43d   : > { %v503_v9 = vpop.xlane.xlu0 %502 }
 0x43e   : > { %vm507_vm0 = vcmp.eq.f32.partialorder %v497_v2, %v503_v9  ;;  %vm508_vm1 = vcmp.eq.f32.partialorder %v498_v3, %v503_v9 }
 0x43f   : > { %v511_v10 = vsel %vm507_vm0, -inf, %v497_v2  ;;  %v512_v11 = vsel %vm508_vm1, -inf, %v498_v3 }
 0x440   : > { %v515_v12 = vmax.f32 %v511_v10, %v512_v11 }
 0x441   : > { %v506_v13 = vpop.xlane.xlu1 %505 }
 0x442   : > { %vm509_vm2 = vcmp.eq.f32.partialorder %v499_v6, %v506_v13  ;;  %vm510_vm3 = vcmp.eq.f32.partialorder %v500_v7, %v506_v13  ;;  %516 = vmax.xlane.f32.xlu0 %v515_v12 }
 0x443   : > { %v513_v14 = vsel %vm509_vm2, -inf, %v499_v6  ;;  %v514_v15 = vsel %vm510_vm3, -inf, %v500_v7 }
 0x444   : > { %v518_v16 = vmax.f32 %v513_v14, %v514_v15 }
 0x446   : > { %519 = vmax.xlane.f32.xlu1 %v518_v16 }
 0x4cf   : > { %v517_v17 = vpop.xlane.xlu0 %516 }
 0x4d0   : > { %vm521_vm4 = vcmp.eq.f32.partialorder %v511_v10, %v517_v17  ;;  %vm522_vm5 = vcmp.eq.f32.partialorder %v512_v11, %v517_v17 }
 0x4d1   : > { %v525_v18 = vsel %vm521_vm4, -inf, %v511_v10  ;;  %v526_v19 = vsel %vm522_vm5, -inf, %v512_v11 }
 0x4d2   : > { %v529_v20 = vmax.f32 %v525_v18, %v526_v19 }
 0x4d3   : > { %v520_v21 = vpop.xlane.xlu1 %519 }
 0x4d4   : > { %vm523_vm6 = vcmp.eq.f32.partialorder %v513_v14, %v520_v21  ;;  %vm524_vm7 = vcmp.eq.f32.partialorder %v514_v15, %v520_v21  ;;  %530 = vmax.xlane.f32.xlu0 %v529_v20 }
 0x4d5   : > { %v527_v22 = vsel %vm523_vm6, -inf, %v513_v14  ;;  %v528_v23 = vsel %vm524_vm7, -inf, %v514_v15 }
 0x4d6   : > { %v532_v24 = vmax.f32 %v527_v22, %v528_v23 }
 0x4d8   : > { %533 = vmax.xlane.f32.xlu1 %v532_v24 }
 0x561   : > { %v531_v42 = vpop.xlane.xlu0 %530 }
 0x562   : > { %vm535_vm8 = vcmp.eq.f32.partialorder %v525_v18, %v531_v42  ;;  %vm536_vm9 = vcmp.eq.f32.partialorder %v526_v19, %v531_v42 }
 0x563   : > { %v539_v43 = vsel %vm535_vm8, -inf, %v525_v18  ;;  %v540_v44 = vsel %vm536_vm9, -inf, %v526_v19 }
 0x564   : > { %v543_v45 = vmax.f32 %v539_v43, %v540_v44 }
 0x565   : > { %v534_v46 = vpop.xlane.xlu1 %533 }
 0x566   : > { %vm537_vm10 = vcmp.eq.f32.partialorder %v527_v22, %v534_v46  ;;  %vm538_vm11 = vcmp.eq.f32.partialorder %v528_v23, %v534_v46  ;;  %544 = vmax.xlane.f32.xlu0 %v543_v45 }
 0x567   : > { %v541_v47 = vsel %vm537_vm10, -inf, %v527_v22  ;;  %v542_v48 = vsel %vm538_vm11, -inf, %v528_v23 }
 0x568   : > { %v546_v49 = vmax.f32 %v541_v47, %v542_v48 }
 0x56a   : > { %547 = vmax.xlane.f32.xlu1 %v546_v49 }
 0x5f3   : > { %v545_v53 = vpop.xlane.xlu0 %544 }
 0x5f4   : > { %vm549_vm12 = vcmp.ge.f32.partialorder %v1535_v32, %v545_v53  ;;  %vm550_vm13 = vcmp.ge.f32.partialorder %v1537_v35, %v545_v53 }
 0x5f5   : > { %v553_v54 = vsel %vm549_vm12, %v1535_v32, 0.0  ;;  %v554_v55 = vsel %vm550_vm13, %v1537_v35, 0.0 }
 0x5f6   : > { %557 = vst [vmem:[%s275_s16] sm:$0xff] %v553_v54  ;;  %558 = vst [vmem:[%s275_s16 + $0x8] sm:$0xff] %v554_v55 }
 0x5f7   : > { %v548_v56 = vpop.xlane.xlu1 %547 }
 0x5f8   : > { %vm551_vm14 = vcmp.ge.f32.partialorder %v1539_v37, %v548_v56  ;;  %vm552_vm15 = vcmp.ge.f32.partialorder %v1541_v38, %v548_v56 }
 0x5f9   : > { %v555_v57 = vsel %vm551_vm14, %v1539_v37, 0.0  ;;  %v556_v58 = vsel %vm552_vm15, %v1541_v38, 0.0  ;;  %vm943_vm0 = vmpackc.low %vm551_vm14, %vm549_vm12 }
 0x5fa   : > { %559 = vst [vmem:[%s275_s16 + $0x10] sm:$0xff] %v555_v57  ;;  %560 = vst [vmem:[%s275_s16 + $0x18] sm:$0xff] %v556_v58 }
 0x5fb   : > { %vm940_vm1 = vmpackc.low %vm552_vm15, %vm550_vm13 }
 0x5fc   : > { %942 = vmatprep.mubr.msk.bf16.mxu1 %vm940_vm1, %v941_v59 }
 0x5fd   : > { %945 = vmatmul.mubr.msk.bf16.vlgmr.msra.gmra.mrb[0].mxu1 %vm943_vm0, %v944_v60 }
 0x5fe   : > { %1201 = shalt.err (!%p1198_p1)
}
 0x5ff   : > { %s1202_s24 = scalar_lea.hbm %s1578_s29, 512  ;;  %s1206_s16 = scalar_lea.hbm %s1660_s4, 1024 }
 0x600   : > { %p1203_p13 = scmp.ne.s32.totalorder %s1578_s29, %s1202_s24  ;;  %p1207_p4 = scmp.lt.u32.totalorder %s1578_s29, %s1660_s4 }
 0x601   : > { %p1208_p7 = scmp.lt.u32.totalorder %s1206_s16, %s1202_s24  ;;  %p1210_p11 = scmp.lt.u32.totalorder %s1202_s24, %s1578_s29 }
 0x602   : > { %p1204_p6 = pnand %p1203_p13, %p1675_p0 }
 0x603   : > { %p1209_p8 = por %p1208_p7, %p1207_p4 }
 0x604   : > { %p1205_p10 = pneg %p1204_p6 }
 0x605   : > { %p1211_p2 = por %p1210_p11, %p1209_p8 }
 0x607   : > { %p1212_p3 = pnand %p1211_p2, %p1205_p10 }
 0x609   : > { %1215 = shalt.err (!%p1212_p3)
}
 0x60a   : > { %s1301_s11 = smov 256   ;;  %s1302_s30 = smov 16  }
 0x60b   : > { %991 = dma.vmem_to_hbm [thread:$0]  (%p1675_p0), %s1572_s28, 512, %s1578_s29, %s735_s12, %s1301_s11, %s1301_s11, %s1302_s30  }
 0x60c   : > { %s282_s9 = scalar_lea.vmem [#allocation9], %s903_s6  ;;  %s958_s14 = sshll.u32 %s1357_s22, 8 }
 0x60d   : > { %s770_s10 = sshll.u32 %s282_s9, 4  ;;  %s1612_s15 = scalar_lea.hbm %s1661_s5, %s958_s14  ;;  %s1607_s10 = int_to_ptr.vmem [resolvable:$true] %s770_s10 }
 0x60e   : > { %s740_s6 = scalar_lea.sflag [#allocation10], %s1514_s27  ;;  %s1216_s28 = scalar_lea.vmem %s1607_s10, 256 }
 0x60f   : > { %p1217_p5 = scmp.ne.s32.totalorder %s1607_s10, %s1216_s28  ;;  %s1303_s22 = smov [#allocation9]  }
 0x610   : > { %s1220_s29 = sshll.u32 %s1303_s22, 4  ;;  %s1221_s29 = int_to_ptr.vmem [resolvable:$false] %s1220_s29 }
 0x611   : > { %p1218_p9 = pnand %p1217_p5, %p1675_p0  ;;  %s1222_s12 = scalar_lea.vmem %s1221_s29, 512 }
 0x612   : > { %p1223_p1 = scmp.lt.s32.totalorder %s1607_s10, %s1221_s29  ;;  %p1224_p13 = scmp.lt.s32.totalorder %s1222_s12, %s1216_s28 }
 0x613   : > { %p1219_p12 = pneg %p1218_p9 }
 0x614   : > { %p1225_p6 = por %p1224_p13, %p1223_p1 }
 0x616   : > { %p1226_p10 = pnand %p1225_p6, %p1219_p12 }
 0x6d0   : > { %v975_v32 = vpop.f32.mrb[0].mxu1 }
 0x6d1   : > { %v976_v35 = vpop.f32.mrb[1].mxu1 }
 0x6d2   : > { %v977_v37 = vadd.f32 %v976_v35, %v975_v32  ;;  %v978_v38 = vpop.f32.mrb[2].mxu1 }
 0x6d3   : > { %v979_v61 = vpop.f32.mrb[3].mxu1 }
 0x6d4   : > { %732 = vst [vmem:[%s282_s9] sm:$0xff] %v977_v37  ;;  %v980_v62 = vadd.f32 %v979_v61, %v978_v38 }
 0x6d6   : > { %733 = vst [vmem:[%s282_s9 + $0x8] sm:$0xff] %v980_v62 }
 0x6d7   : > { %1229 = shalt.err (!%p1226_p10)
}
 0x6d8   : > { %s1230_s16 = scalar_lea.hbm %s1612_s15, 256  ;;  %s1234_s11 = scalar_lea.hbm %s1661_s5, 512 }
 0x6d9   : > { %p1231_p4 = scmp.ne.s32.totalorder %s1612_s15, %s1230_s16  ;;  %p1235_p11 = scmp.lt.u32.totalorder %s1612_s15, %s1661_s5 }
 0x6da   : > { %p1236_p2 = scmp.lt.u32.totalorder %s1234_s11, %s1230_s16  ;;  %p1238_p5 = scmp.lt.u32.totalorder %s1230_s16, %s1612_s15 }
 0x6db   : > { %p1232_p7 = pnand %p1231_p4, %p1675_p0 }
 0x6dc   : > { %p1237_p3 = por %p1236_p2, %p1235_p11 }
 0x6dd   : > { %p1233_p8 = pneg %p1232_p7 }
 0x6de   : > { %p1239_p9 = por %p1238_p5, %p1237_p3 }
 0x6e0   : > { %p1240_p12 = pnand %p1239_p9, %p1233_p8 }
 0x6e2   : > { %1243 = shalt.err (!%p1240_p12)
}
 0x6e3   : > { %s1304_s14 = smov 128   ;;  %s1305_s24 = smov 8  }
 0x6e4   : > { %992 = dma.vmem_to_hbm [thread:$0]  (%p1675_p0), %s1607_s10, 256, %s1612_s15, %s740_s6, %s1304_s14, %s1304_s14, %s1305_s24  }
 0x6e5 PF: > { %s785_s26 = sand.u32 1, %s1278_s18   ;;  %p1676_p1 = scmp.ne.s32.totalorder %s1666_s25, 0 }
 0x6e6   : > { %p1677_p13 = scmp.ge.s32.totalorder %s1290_s21, 2  ;;  %s786_s28 = scalar_lea.sflag [#allocation4], %s785_s26 }
 0x6e8   : > { %p1007_p6 = pnand %p1677_p13, %p1676_p1 }
 0x6ea   : > { %1269 = dma.done.wait (!%p1007_p6), %s786_s28, 512  }
 0x6eb   : > { %1271 = vsyncadd (!%p1007_p6), %s786_s28, 4294966784  ;;  %s795_s22 = scalar_lea.sflag [#allocation10], %s785_s26 }
 0x6ec   : > { %1273 = dma.done.wait (!%p1007_p6), %s795_s22, 256  }
 0x6ed   : > { %1275 = vsyncadd (!%p1007_p6), %s795_s22, 4294967040  ;;  %p23_p0 = scmp.ge.s32.totalorder %s1449_s23, 4   ;;  %s1678_s18 = smov %s1282_s19 }
 0x6ee   : > { %s1679_s19 = smov %s1286_s20  ;;  %s1680_s20 = smov %s1458_s7 }
 0x6ef   : > { %s1681_s21 = smov %s1449_s23  ;;  %25 = sbr.rel (!%p23_p0) target bundleno = 8 (0x8), region = 106 }
 0x6f6   :  { %800 = vsyncpa [#allocation3], 1 }
 0x6f7   :  { %802 = vsyncpa [#allocation3 + $0x1], 1 }
 0x6f8   :  { %803 = vsyncpa [#allocation6], 1 }
 0x6f9   :  { %804 = vsyncpa [#allocation4], 1 }
 0x6fa   :  { %806 = vsyncpa [#allocation4 + $0x1], 1 }
 0x6fb   :  { %807 = vsyncpa [#allocation10], 1 }
 0x6fc   :  { %809 = vsyncpa [#allocation10 + $0x1], 1 }

// kernel: tpu_custom_call.1
= control target key start
LH: loop header
LB: loop body
LE: loop exit
PB: predicated region body
PF: predicated region fallthrough
CT: control target
= control target key end

     0   :  { %11 = vsyncpa [#allocation3], 0  ;;  %s1656_s0 = inlined_call_operand.hbm [shape: f32[32,128], index: 0, kind: input, shape index: {}]   ;;  %s1657_s1 = inlined_call_operand.hbm [shape: bf16[128,256], index: 1, kind: input, shape index: {}]   ;;  %s1658_s2 = inlined_call_operand.vmem [shape: f32[1,256], index: 2, kind: input, shape index: {}]   ;;  %s1659_s3 = inlined_call_operand.hbm [shape: bf16[256,128], index: 3, kind: input, shape index: {}]   ;;  %s1660_s4 = inlined_call_operand.hbm [shape: f32[32,256], index: 4, kind: output, shape index: {0}]   ;;  %s1661_s5 = inlined_call_operand.hbm [shape: f32[32,128], index: 5, kind: output, shape index: {1}]  }
   0x1   :  { %13 = vsyncpa [#allocation3 + $0x1], 0 }
   0x2   :  { %14 = vsyncpa [#allocation6], 0 }
   0x3   :  { %15 = vsyncpa [#allocation4], 0 }
   0x4   :  { %17 = vsyncpa [#allocation4 + $0x1], 0 }
   0x5   :  { %18 = vsyncpa [#allocation10], 0 }
   0x6   :  { %20 = vsyncpa [#allocation10 + $0x1], 0  ;;  %s1336_s18 = smov 0   ;;  %s1338_s19 = smov 0  }
   0x7   :  { %s1340_s20 = smov 0   ;;  %s1342_s21 = smov 0  }
   0x8 LB: > { %s1357_s22 = sadd.s32 4294967295, %s1290_s21   ;;  %s894_s23 = sadd.s32 4294967294, %s1290_s21   ;;  %s1290_s21 = sphi %s1342_s21, %s1681_s21   ;;  %s1286_s20 = sphi %s1340_s20, %s1680_s20   ;;  %s1282_s19 = sphi %s1338_s19, %s1679_s19   ;;  %s1278_s18 = sphi %s1336_s18, %s1678_s18  }
   0x9   : > { %p46_p0 = scmp.ne.s32.totalorder %s1282_s19, %s1278_s18  ;;  %p1662_p1 = scmp.eq.s32.totalorder %s1357_s22, 0 }
   0xa   : > { %p139_p3 = scmp.eq.s32.totalorder %s894_s23, 1  ;;  %p895_p5 = scmp.ge.s32.totalorder %s1290_s21, 1 }
   0xb   : > { %p1366_p4 = por %p1662_p1, %p46_p0  ;;  %p172_p7 = scmp.lt.s32.totalorder %s1290_s21, 3 }
   0xc   : > { %p1371_p6 = por %p139_p3, %p46_p0  ;;  %s1292_s27 = smov [#allocation5]  }
   0xd   : > { %s1665_s24 = scalar_select %p1366_p4, 1, 0 }
   0xe   : > { %s1666_s25 = scalar_select %p1371_p6, 1, 0 }
   0xf   : > { %p1376_p8 = pnand %p895_p5, %p172_p7  ;;  %s184_s28 = sshll.u32 %s1292_s27, 4  ;;  %s1380_s28 = int_to_ptr.vmem [resolvable:$true] %s184_s28 }
  0x10   : > { %s1293_s30 = smov [#allocation7]   ;;  %s1102_s9 = scalar_lea.hbm %s1657_s1, 2048 }
  0x11   : > { %p995_p9 = pneg %p1376_p8  ;;  %s200_s6 = sshll.u32 %s1293_s30, 4  ;;  %s1391_s6 = int_to_ptr.vmem [resolvable:$true] %s200_s6 }
  0x12   : > { %p1103_p12 = scmp.ne.s32.totalorder %s1657_s1, %s1102_s9  ;;  %p1109_p5 = scmp.lt.u32.totalorder %s1102_s9, %s1657_s1 }
  0x13   : > { %p1387_p11 = pnand %p995_p9, %p1662_p1 }
  0x15   : > { %p1104_p13 = pneg %p1387_p11 }
  0x17   : > { %p1105_p0 = pnand %p1104_p13, %p1103_p12 }
  0x19   : > { %p1106_p3 = pneg %p1105_p0 }
  0x1b   : > { %p1111_p7 = pnand %p1109_p5, %p1106_p3 }
  0x1d   : > { %1114 = shalt.err (!%p1111_p7)
}
  0x1e   : > { %s1115_s14 = scalar_lea.vmem %s1380_s28, 2048  ;;  %p1123_p2 = scmp.lt.s32.totalorder %s1380_s28, %s1380_s28 }
  0x1f   : > { %p1116_p9 = scmp.ne.s32.totalorder %s1380_s28, %s1115_s14  ;;  %p1124_p12 = scmp.lt.s32.totalorder %s1115_s14, %s1115_s14 }
  0x21   : > { %p1118_p10 = pnand %p1116_p9, %p1104_p13  ;;  %p1125_p0 = por %p1124_p12, %p1123_p2 }
  0x23   : > { %p1119_p1 = pneg %p1118_p10 }
  0x25   : > { %p1126_p6 = pnand %p1125_p0, %p1119_p1 }
  0x27   : > { %1129 = shalt.err (!%p1126_p6)
}
  0x28   : > { %s1294_s15 = smov 128   ;;  %s1295_s16 = smov 8  }
  0x29   : > { %998 = dma.hbm_to_vmem [thread:$0]  (!%p1387_p11), %s1657_s1, 2048, %s1380_s28, [#allocation6], %s1294_s15, %s1294_s15, %s1295_s16  }
  0x2a   : > { %s1130_s7 = scalar_lea.hbm %s1659_s3, 2048 }
  0x2b   : > { %p1131_p1 = scmp.ne.s32.totalorder %s1659_s3, %s1130_s7  ;;  %p1137_p10 = scmp.lt.u32.totalorder %s1130_s7, %s1659_s3 }
  0x2d   : > { %p1133_p2 = pnand %p1131_p1, %p1104_p13 }
  0x2f   : > { %p1134_p6 = pneg %p1133_p2 }
  0x31   : > { %p1139_p3 = pnand %p1137_p10, %p1134_p6 }
  0x33   : > { %1142 = shalt.err (!%p1139_p3)
}
  0x34   : > { %s1143_s28 = scalar_lea.vmem %s1391_s6, 2048  ;;  %p1151_p12 = scmp.lt.s32.totalorder %s1391_s6, %s1391_s6 }
  0x35   : > { %p1144_p5 = scmp.ne.s32.totalorder %s1391_s6, %s1143_s28  ;;  %p1152_p0 = scmp.lt.s32.totalorder %s1143_s28, %s1143_s28 }
  0x37   : > { %p1146_p7 = pnand %p1144_p5, %p1104_p13  ;;  %p1153_p1 = por %p1152_p0, %p1151_p12 }
  0x39   : > { %p1147_p9 = pneg %p1146_p7 }
  0x3b   : > { %p1154_p2 = pnand %p1153_p1, %p1147_p9 }
  0x3d   : > { %1157 = shalt.err (!%p1154_p2)
}
  0x3e   : > { %s1296_s12 = smov 64   ;;  %s1297_s13 = smov 4  }
  0x3f   : > { %1001 = dma.hbm_to_vmem [thread:$0]  (!%p1387_p11), %s1659_s3, 2048, %s1391_s6, [#allocation6], %s1296_s12, %s1296_s12, %s1297_s13  }
  0x40   : > { %s1449_s23 = sadd.s32 1, %s1290_s21   ;;  %s33_s30 = sadd.s32 1, %s1286_s20 }
  0x41   : > { %s30_s27 = ssub.s32 %s1290_s21, %s1449_s23  ;;  %p40_p6 = scmp.ne.s32.totalorder %s1286_s20, %s1282_s19 }
  0x42   : > { %p31_p13 = scmp.eq.s32.totalorder %s30_s27, 0  ;;  %p41_p10 = scmp.eq.s32.totalorder %s1290_s21, 0 }
  0x43   : > { %p1669_p5 = scmp.eq.s32.totalorder %s1357_s22, 1  ;;  %p1015_p9 = scmp.lt.s32.totalorder %s1290_s21, 2 }
  0x44   : > { %s1458_s7 = scalar_select %p31_p13, %s1286_s20, %s33_s30  }
  0x45   : > { %p42_p3 = por %p41_p10, %p40_p6  ;;  %p1462_p7 = por %p1669_p5, %p40_p6 }
  0x46   : > { %s214_s29 = sand.u32 1, %s1286_s20   ;;  %s955_s6 = sshll.u32 %s1290_s21, 8 }
  0x47   : > { %s1670_s8 = scalar_select %p1462_p7, 1, 0 }
  0x48   : > { %s899_s9 = sshll.u32 %s214_s29, 4  ;;  %s1472_s28 = scalar_lea.hbm %s1656_s0, %s955_s6 }
  0x49   : > { %s218_s12 = scalar_lea.vmem [#allocation2], %s899_s9  ;;  %p1476_p11 = pnand %p1015_p9, %p42_p3 }
  0x4a   : > { %s225_s13 = sshll.u32 %s218_s12, 4  ;;  %s1480_s17 = scalar_lea.sflag [#allocation3], %s214_s29  ;;  %s1474_s13 = int_to_ptr.vmem [resolvable:$true] %s225_s13 }
  0x4b   : > { %s1158_s27 = scalar_lea.hbm %s1472_s28, 256  ;;  %p1160_p0 = pneg %p1476_p11 }
  0x4c   : > { %p1159_p12 = scmp.ne.s32.totalorder %s1472_s28, %s1158_s27  ;;  %s1163_s6 = scalar_lea.hbm %s1656_s0, 512 }
  0x4d   : > { %p1164_p13 = scmp.lt.u32.totalorder %s1472_s28, %s1656_s0  ;;  %p1165_p6 = scmp.lt.u32.totalorder %s1163_s6, %s1158_s27 }
  0x4e   : > { %p1161_p1 = pnand %p1160_p0, %p1159_p12  ;;  %p1167_p3 = scmp.lt.u32.totalorder %s1158_s27, %s1472_s28 }
  0x4f   : > { %p1166_p10 = por %p1165_p6, %p1164_p13 }
  0x50   : > { %p1162_p2 = pneg %p1161_p1 }
  0x51   : > { %p1168_p5 = por %p1167_p3, %p1166_p10 }
  0x53   : > { %p1169_p9 = pnand %p1168_p5, %p1162_p2 }
  0x55   : > { %1172 = shalt.err (!%p1169_p9)
}
  0x56   : > { %s1173_s29 = scalar_lea.vmem %s1474_s13, 256  ;;  %s1298_s12 = smov [#allocation2]  }
  0x57   : > { %p1174_p12 = scmp.ne.s32.totalorder %s1474_s13, %s1173_s29  ;;  %s1178_s30 = sshll.u32 %s1298_s12, 4  ;;  %s1179_s30 = int_to_ptr.vmem [resolvable:$false] %s1178_s30 }
  0x58   : > { %s1180_s9 = scalar_lea.vmem %s1179_s30, 512  ;;  %p1181_p4 = scmp.lt.s32.totalorder %s1474_s13, %s1179_s30 }
  0x59   : > { %p1176_p1 = pnand %p1174_p12, %p1160_p0  ;;  %p1182_p13 = scmp.lt.s32.totalorder %s1180_s9, %s1173_s29 }
  0x5b   : > { %p1177_p7 = pneg %p1176_p1  ;;  %p1183_p6 = por %p1182_p13, %p1181_p4 }
  0x5d   : > { %p1184_p10 = pnand %p1183_p6, %p1177_p7 }
  0x5f   : > { %1187 = shalt.err (!%p1184_p10)
}
  0x60   : > { %1005 = dma.hbm_to_vmem [thread:$0]  (!%p1476_p11), %s1472_s28, 256, %s1474_s13, %s1480_s17, %s1294_s15, %s1294_s15, %s1295_s16  }
  0x61   : > { %237 = sbr.rel (%p1376_p8) target bundleno = 1765 (0x6e5), region = 36  ;;  %s1514_s27 = sand.u32 (!%p1376_p8), 1, %s1282_s19  }
  0x62   : > { %s903_s6 = sshll.u32 (!%p1376_p8), %s1514_s27, 4  ;;  %s240_s10 = scalar_lea.sflag (!%p1376_p8), [#allocation3], %s1514_s27 }
  0x63   : > { %s1520_s14 = scalar_lea.vmem (!%p1376_p8), [#allocation2], %s903_s6  ;;  %p1672_p4 = scmp.ne.s32.totalorder (!%p1376_p8), %s1665_s24, 0 }
  0x68   : > { %1261 = dma.done.wait (%p1672_p4), %s240_s10, 256  }
  0x69   : > { %1263 = vsyncadd (%p1672_p4), %s240_s10, 4294967040  ;;  %p1673_p7 = scmp.eq.s32.totalorder %s1357_s22, 0 }
  0x6b   : > { %1265 = dma.done.wait (%p1673_p7), [#allocation6], 4096   ;;  %p1674_p8 = pmov %p1673_p7 }
  0x6c   : > { %v1299_v0 = vmov 0   ;;  %v1062_v1 = vld [vmem:[#allocation5 + $0x4] ss:$8 sps:$4 sm:$0xff]   ;;  %v1064_v2 = vld [vmem:[#allocation5] ss:$8 sps:$4 sm:$0xff]   ;;  %v308_v20 = vlaneseq  ;;  %s906_s15 = sshll.u32 %s1514_s27, 5 }
  0x6d   : > { %1267 = vsyncadd (%p1674_p8), [#allocation6], 4294963200  ;;  %430 = vmatprep.mubr.bf16.mxu0 %v1299_v0  ;;  %398 = vmatprep.subr.bf16.mxu0 %v1062_v1  ;;  %v1065_v3 = vld [vmem:[#allocation5 + $0x14] ss:$8 sps:$4 sm:$0xff]   ;;  %v1067_v4 = vld [vmem:[#allocation5 + $0x10] ss:$8 sps:$4 sm:$0xff]  }
  0x6e   : > { %399 = vmatpush1.bf16.msra.mxu0 %v1064_v2  ;;  %v1068_v5 = vld [vmem:[#allocation5 + $0x24] ss:$8 sps:$4 sm:$0xff]   ;;  %v1070_v6 = vld [vmem:[#allocation5 + $0x20] ss:$8 sps:$4 sm:$0xff]   ;;  %v1071_v7 = vld [vmem:[#allocation5 + $0x34] ss:$8 sps:$4 sm:$0xff]  }
  0x6f   : > { %400 = vmatprep.subr.bf16.mxu0 %v1065_v3  ;;  %v1073_v8 = vld [vmem:[#allocation5 + $0x30] ss:$8 sps:$4 sm:$0xff]   ;;  %v1074_v9 = vld [vmem:[#allocation5 + $0x44] ss:$8 sps:$4 sm:$0xff]   ;;  %v1076_v10 = vld [vmem:[#allocation5 + $0x40] ss:$8 sps:$4 sm:$0xff]  }
  0x70   : > { %v1077_v11 = vld [vmem:[#allocation5 + $0x54] ss:$8 sps:$4 sm:$0xff]   ;;  %v1079_v12 = vld [vmem:[#allocation5 + $0x50] ss:$8 sps:$4 sm:$0xff]   ;;  %v1080_v13 = vld [vmem:[#allocation5 + $0x64] ss:$8 sps:$4 sm:$0xff]  }
  0x71   : > { %v1082_v14 = vld [vmem:[#allocation5 + $0x60] ss:$8 sps:$4 sm:$0xff]   ;;  %v1083_v15 = vld [vmem:[#allocation5 + $0x74] ss:$8 sps:$4 sm:$0xff]   ;;  %v1085_v16 = vld [vmem:[#allocation5 + $0x70] ss:$8 sps:$4 sm:$0xff]  }
  0x72   : > { %401 = vmatpush1.bf16.msra.mxu0 %v1067_v4  ;;  %v287_v17 = vld [vmem:[%s1520_s14] sm:$0xff]  ;;  %v288_v18 = vld [vmem:[%s1520_s14 + $0x8] sm:$0xff]  ;;  %v309_v21 = vshrl.u32 %v308_v20, 7  ;;  %s275_s16 = scalar_lea.vmem [#allocation8], %s906_s15  ;;  %s957_s13 = sshll.u32 %s1357_s22, 9 }
  0x73   : > { %402 = vmatprep.subr.bf16.mxu0 %v1068_v5  ;;  %v289_v19 = vpack.c.bf16 %v288_v18, %v287_v17  ;;  %v306_v23 = vld [vmem:[%s1658_s2] sm:$0x3]  ;;  %s754_s28 = sshll.u32 %s275_s16, 4  ;;  %s1578_s29 = scalar_lea.hbm %s1660_s4, %s957_s13  ;;  %s1572_s28 = int_to_ptr.vmem [resolvable:$true] %s754_s28 }
  0x74   : > { %v310_v22 = vsub.s32 0, %v309_v21  ;;  %v314_v24 = vsub.s32 1, %v309_v21  ;;  %s735_s12 = scalar_lea.sflag [#allocation4], %s1514_s27  ;;  %s1188_s30 = scalar_lea.vmem %s1572_s28, 512 }
  0x75   : > { %p1189_p11 = scmp.ne.s32.totalorder %s1572_s28, %s1188_s30  ;;  %p1675_p0 = scmp.ne.s32.totalorder %s1670_s8, 0 }
  0x76   : > { %403 = vmatpush1.bf16.msra.mxu0 %v1070_v6  ;;  %v311_v25 = vrot.slane %v306_v23, %v310_v22  ;;  %v315_v26 = vrot.slane %v306_v23, %v314_v24  ;;  %s1300_s9 = smov [#allocation8]  }
  0x77   : > { %404 = vmatprep.subr.bf16.mxu0 %v1071_v7  ;;  %p1190_p2 = pnand %p1189_p11, %p1675_p0  ;;  %s1192_s10 = sshll.u32 %s1300_s9, 4  ;;  %s1193_s10 = int_to_ptr.vmem [resolvable:$false] %s1192_s10 }
  0x78   : > { %s1194_s14 = scalar_lea.vmem %s1193_s10, 1024  ;;  %p1195_p5 = scmp.lt.s32.totalorder %s1572_s28, %s1193_s10 }
  0x79   : > { %p1191_p3 = pneg %p1190_p2  ;;  %p1196_p9 = scmp.lt.s32.totalorder %s1194_s14, %s1188_s30 }
  0x7a   : > { %405 = vmatpush1.bf16.msra.mxu0 %v1073_v8 }
  0x7b   : > { %406 = vmatprep.subr.bf16.mxu0 %v1074_v9  ;;  %p1197_p12 = por %p1196_p9, %p1195_p5 }
  0x7d   : > { %p1198_p1 = pnand %p1197_p12, %p1191_p3 }
  0x7e   : > { %407 = vmatpush1.bf16.msra.mxu0 %v1076_v10 }
  0x7f   : > { %408 = vmatprep.subr.bf16.mxu0 %v1077_v11 }
  0x82   : > { %409 = vmatpush1.bf16.msra.mxu0 %v1079_v12 }
  0x83   : > { %410 = vmatprep.subr.bf16.mxu0 %v1080_v13 }
  0x86   : > { %411 = vmatpush1.bf16.msra.mxu0 %v1082_v14 }
  0x87   : > { %412 = vmatprep.subr.bf16.mxu0 %v1083_v15 }
  0x8a   : > { %413 = vmatpush1.bf16.msra.mxu0 %v1085_v16 }
  0x8d   : > { %431 = vmatmul.mubr.bf16.vlgmr.msra.gmra.mrb[0].mxu0 %v289_v19 }
 0x160   : > { %v432_v27 = vpop.f32.mrb[0].mxu0 }
 0x161   : > { %v433_v28 = vadd.f32 %v432_v27, %v311_v25  ;;  %v434_v29 = vpop.f32.mrb[1].mxu0  ;;  %v1088_v27 = vld [vmem:[#allocation7 + $0x48] sm:$0xff]  }
 0x162   : > { %v435_v30 = vadd.f32 %v434_v29, %v315_v26  ;;  %v436_v31 = vpop.f32.mrb[2].mxu0  ;;  %v1090_v29 = vld [vmem:[#allocation7 + $0x50] sm:$0xff]  }
 0x163   : > { %v1535_v32 = vmax.f32 %v433_v28, 0.0  ;;  %v437_v33 = vadd.f32 %v436_v31, %v311_v25  ;;  %v438_v34 = vpop.f32.mrb[3].mxu0  ;;  %v1086_v25 = vld [vmem:[#allocation7 + $0x40] sm:$0xff]   ;;  %v1089_v28 = vld [vmem:[#allocation7 + $0x8] sm:$0xff]   ;;  %v1092_v31 = vld [vmem:[#allocation7 + $0x58] sm:$0xff]  }
 0x164   : > { %v1537_v35 = vmax.f32 %v435_v30, 0.0  ;;  %v439_v36 = vadd.f32 %v438_v34, %v315_v26  ;;  %v1087_v26 = vld [vmem:[#allocation7] sm:$0xff]   ;;  %959 = vmatprep.subr.bf16.mxu1 %v1086_v25  ;;  %v1091_v30 = vld [vmem:[#allocation7 + $0x10] sm:$0xff]  }
 0x165   : > { %v1539_v37 = vmax.f32 %v437_v33, 0.0  ;;  %960 = vmatpush3.bf16.msra.mxu1 %v1087_v26  ;;  %v1093_v33 = vld [vmem:[#allocation7 + $0x18] sm:$0xff]   ;;  %v1094_v34 = vld [vmem:[#allocation7 + $0x60] sm:$0xff]  }
 0x166   : > { %v1541_v38 = vmax.f32 %v439_v36, 0.0  ;;  %v445_v39 = vmax.f32 %v1535_v32, %v1537_v35  ;;  %961 = vmatprep.subr.bf16.mxu1 %v1088_v27  ;;  %v1095_v36 = vld [vmem:[#allocation7 + $0x20] sm:$0xff]  }
 0x168   : > { %446 = vmax.xlane.f32.xlu0 %v445_v39  ;;  %v448_v40 = vmax.f32 %v1539_v37, %v1541_v38  ;;  %v1096_v39 = vld [vmem:[#allocation7 + $0x68] sm:$0xff]  }
 0x169   : > { %962 = vmatpush3.bf16.msra.mxu1 %v1089_v28 }
 0x16a   : > { %963 = vmatprep.subr.bf16.mxu1 %v1090_v29 }
 0x16c   : > { %449 = vmax.xlane.f32.xlu0 %v448_v40  ;;  %v1097_v40 = vld [vmem:[#allocation7 + $0x28] sm:$0xff]  }
 0x16d   : > { %964 = vmatpush3.bf16.msra.mxu1 %v1091_v30 }
 0x16e   : > { %965 = vmatprep.subr.bf16.mxu1 %v1092_v31 }
 0x171   : > { %966 = vmatpush3.bf16.msra.mxu1 %v1093_v33 }
 0x172   : > { %967 = vmatprep.subr.bf16.mxu1 %v1094_v34 }
 0x175   : > { %968 = vmatpush3.bf16.msra.mxu1 %v1095_v36 }
 0x176   : > { %969 = vmatprep.subr.bf16.mxu1 %v1096_v39 }
 0x179   : > { %970 = vmatpush3.bf16.msra.mxu1 %v1097_v40 }
 0x1f5   : > { %v447_v41 = vpop.xlane.xlu0 %446 }
 0x1f6   : > { %vm451_vm0 = vcmp.eq.f32.partialorder %v1535_v32, %v447_v41  ;;  %vm452_vm1 = vcmp.eq.f32.partialorder %v1537_v35, %v447_v41  ;;  %v1098_v41 = vld [vmem:[#allocation7 + $0x70] sm:$0xff]  }
 0x1f7   : > { %v455_v42 = vsel %vm451_vm0, -inf, %v1535_v32  ;;  %v456_v43 = vsel %vm452_vm1, -inf, %v1537_v35  ;;  %971 = vmatprep.subr.bf16.mxu1 %v1098_v41 }
 0x1f8   : > { %v459_v44 = vmax.f32 %v455_v42, %v456_v43 }
 0x1f9   : > { %v450_v45 = vpop.xlane.xlu0 %449 }
 0x1fa   : > { %vm453_vm2 = vcmp.eq.f32.partialorder %v1539_v37, %v450_v45  ;;  %vm454_vm3 = vcmp.eq.f32.partialorder %v1541_v38, %v450_v45  ;;  %460 = vmax.xlane.f32.xlu1 %v459_v44 }
 0x1fb   : > { %v457_v46 = vsel %vm453_vm2, -inf, %v1539_v37  ;;  %v458_v47 = vsel %vm454_vm3, -inf, %v1541_v38 }
 0x1fc   : > { %v462_v48 = vmax.f32 %v457_v46, %v458_v47 }
 0x1fe   : > { %463 = vmax.xlane.f32.xlu1 %v462_v48 }
 0x287   : > { %v461_v49 = vpop.xlane.xlu1 %460 }
 0x288   : > { %vm465_vm4 = vcmp.eq.f32.partialorder %v455_v42, %v461_v49  ;;  %vm466_vm5 = vcmp.eq.f32.partialorder %v456_v43, %v461_v49 }
 0x289   : > { %v469_v50 = vsel %vm465_vm4, -inf, %v455_v42  ;;  %v470_v51 = vsel %vm466_vm5, -inf, %v456_v43 }
 0x28a   : > { %v473_v52 = vmax.f32 %v469_v50, %v470_v51 }
 0x28b   : > { %v464_v53 = vpop.xlane.xlu1 %463 }
 0x28c   : > { %vm467_vm6 = vcmp.eq.f32.partialorder %v457_v46, %v464_v53  ;;  %vm468_vm7 = vcmp.eq.f32.partialorder %v458_v47, %v464_v53  ;;  %474 = vmax.xlane.f32.xlu0 %v473_v52  ;;  %v1101_v52 = vld [vmem:[#allocation7 + $0x38] sm:$0xff]  }
 0x28d   : > { %v471_v54 = vsel %vm467_vm6, -inf, %v457_v46  ;;  %v472_v55 = vsel %vm468_vm7, -inf, %v458_v47 }
 0x28e   : > { %v476_v56 = vmax.f32 %v471_v54, %v472_v55 }
 0x290   : > { %477 = vmax.xlane.f32.xlu1 %v476_v56 }
 0x319   : > { %v475_v57 = vpop.xlane.xlu0 %474 }
 0x31a   : > { %vm479_vm8 = vcmp.eq.f32.partialorder %v469_v50, %v475_v57  ;;  %vm480_vm9 = vcmp.eq.f32.partialorder %v470_v51, %v475_v57 }
 0x31b   : > { %v483_v58 = vsel %vm479_vm8, -inf, %v469_v50  ;;  %v484_v59 = vsel %vm480_vm9, -inf, %v470_v51  ;;  %v1099_v50 = vld [vmem:[#allocation7 + $0x30] sm:$0xff]   ;;  %v1100_v51 = vld [vmem:[#allocation7 + $0x78] sm:$0xff]  }
 0x31c   : > { %v487_v60 = vmax.f32 %v483_v58, %v484_v59  ;;  %972 = vmatpush3.bf16.msra.mxu1 %v1099_v50 }
 0x31d   : > { %v478_v61 = vpop.xlane.xlu1 %477  ;;  %973 = vmatprep.subr.bf16.mxu1 %v1100_v51 }
 0x31e   : > { %vm481_vm10 = vcmp.eq.f32.partialorder %v471_v54, %v478_v61  ;;  %vm482_vm11 = vcmp.eq.f32.partialorder %v472_v55, %v478_v61  ;;  %488 = vmax.xlane.f32.xlu0 %v487_v60  ;;  %v944_v60 = vpack.c.bf16 %v1539_v37, %v1535_v32 }
 0x31f   : > { %v485_v62 = vsel %vm481_vm10, -inf, %v471_v54  ;;  %v486_v63 = vsel %vm482_vm11, -inf, %v472_v55 }
 0x320   : > { %v490_v0 = vmax.f32 %v485_v62, %v486_v63  ;;  %974 = vmatpush3.bf16.msra.mxu1 %v1101_v52 }
 0x322   : > { %491 = vmax.xlane.f32.xlu1 %v490_v0 }
 0x3ab   : > { %v489_v1 = vpop.xlane.xlu0 %488 }
 0x3ac   : > { %vm493_vm12 = vcmp.eq.f32.partialorder %v483_v58, %v489_v1  ;;  %vm494_vm13 = vcmp.eq.f32.partialorder %v484_v59, %v489_v1 }
 0x3ad   : > { %v497_v2 = vsel %vm493_vm12, -inf, %v483_v58  ;;  %v498_v3 = vsel %vm494_vm13, -inf, %v484_v59  ;;  %v941_v59 = vpack.c.bf16 %v1541_v38, %v1537_v35 }
 0x3ae   : > { %v501_v4 = vmax.f32 %v497_v2, %v498_v3 }
 0x3af   : > { %v492_v5 = vpop.xlane.xlu1 %491 }
 0x3b0   : > { %vm495_vm14 = vcmp.eq.f32.partialorder %v485_v62, %v492_v5  ;;  %vm496_vm15 = vcmp.eq.f32.partialorder %v486_v63, %v492_v5  ;;  %502 = vmax.xlane.f32.xlu0 %v501_v4 }
 0x3b1   : > { %v499_v6 = vsel %vm495_vm14, -inf, %v485_v62  ;;  %v500_v7 = vsel %vm496_vm15, -inf, %v486_v63 }
 0x3b2   : > { %v504_v8 = vmax.f32 %v499_v6, %v500_v7 }
 0x3b4   : > { %505 = vmax.xlane.f32.xlu1 %v504_v8 }
 0x43d   : > { %v503_v9 = vpop.xlane.xlu0 %502 }
 0x43e   : > { %vm507_vm0 = vcmp.eq.f32.partialorder %v497_v2, %v503_v9  ;;  %vm508_vm1 = vcmp.eq.f32.partialorder %v498_v3, %v503_v9 }
 0x43f   : > { %v511_v10 = vsel %vm507_vm0, -inf, %v497_v2  ;;  %v512_v11 = vsel %vm508_vm1, -inf, %v498_v3 }
 0x440   : > { %v515_v12 = vmax.f32 %v511_v10, %v512_v11 }
 0x441   : > { %v506_v13 = vpop.xlane.xlu1 %505 }
 0x442   : > { %vm509_vm2 = vcmp.eq.f32.partialorder %v499_v6, %v506_v13  ;;  %vm510_vm3 = vcmp.eq.f32.partialorder %v500_v7, %v506_v13  ;;  %516 = vmax.xlane.f32.xlu0 %v515_v12 }
 0x443   : > { %v513_v14 = vsel %vm509_vm2, -inf, %v499_v6  ;;  %v514_v15 = vsel %vm510_vm3, -inf, %v500_v7 }
 0x444   : > { %v518_v16 = vmax.f32 %v513_v14, %v514_v15 }
 0x446   : > { %519 = vmax.xlane.f32.xlu1 %v518_v16 }
 0x4cf   : > { %v517_v17 = vpop.xlane.xlu0 %516 }
 0x4d0   : > { %vm521_vm4 = vcmp.eq.f32.partialorder %v511_v10, %v517_v17  ;;  %vm522_vm5 = vcmp.eq.f32.partialorder %v512_v11, %v517_v17 }
 0x4d1   : > { %v525_v18 = vsel %vm521_vm4, -inf, %v511_v10  ;;  %v526_v19 = vsel %vm522_vm5, -inf, %v512_v11 }
 0x4d2   : > { %v529_v20 = vmax.f32 %v525_v18, %v526_v19 }
 0x4d3   : > { %v520_v21 = vpop.xlane.xlu1 %519 }
 0x4d4   : > { %vm523_vm6 = vcmp.eq.f32.partialorder %v513_v14, %v520_v21  ;;  %vm524_vm7 = vcmp.eq.f32.partialorder %v514_v15, %v520_v21  ;;  %530 = vmax.xlane.f32.xlu0 %v529_v20 }
 0x4d5   : > { %v527_v22 = vsel %vm523_vm6, -inf, %v513_v14  ;;  %v528_v23 = vsel %vm524_vm7, -inf, %v514_v15 }
 0x4d6   : > { %v532_v24 = vmax.f32 %v527_v22, %v528_v23 }
 0x4d8   : > { %533 = vmax.xlane.f32.xlu1 %v532_v24 }
 0x561   : > { %v531_v42 = vpop.xlane.xlu0 %530 }
 0x562   : > { %vm535_vm8 = vcmp.eq.f32.partialorder %v525_v18, %v531_v42  ;;  %vm536_vm9 = vcmp.eq.f32.partialorder %v526_v19, %v531_v42 }
 0x563   : > { %v539_v43 = vsel %vm535_vm8, -inf, %v525_v18  ;;  %v540_v44 = vsel %vm536_vm9, -inf, %v526_v19 }
 0x564   : > { %v543_v45 = vmax.f32 %v539_v43, %v540_v44 }
 0x565   : > { %v534_v46 = vpop.xlane.xlu1 %533 }
 0x566   : > { %vm537_vm10 = vcmp.eq.f32.partialorder %v527_v22, %v534_v46  ;;  %vm538_vm11 = vcmp.eq.f32.partialorder %v528_v23, %v534_v46  ;;  %544 = vmax.xlane.f32.xlu0 %v543_v45 }
 0x567   : > { %v541_v47 = vsel %vm537_vm10, -inf, %v527_v22  ;;  %v542_v48 = vsel %vm538_vm11, -inf, %v528_v23 }
 0x568   : > { %v546_v49 = vmax.f32 %v541_v47, %v542_v48 }
 0x56a   : > { %547 = vmax.xlane.f32.xlu1 %v546_v49 }
 0x5f3   : > { %v545_v53 = vpop.xlane.xlu0 %544 }
 0x5f4   : > { %vm549_vm12 = vcmp.ge.f32.partialorder %v1535_v32, %v545_v53  ;;  %vm550_vm13 = vcmp.ge.f32.partialorder %v1537_v35, %v545_v53 }
 0x5f5   : > { %v553_v54 = vsel %vm549_vm12, %v1535_v32, 0.0  ;;  %v554_v55 = vsel %vm550_vm13, %v1537_v35, 0.0 }
 0x5f6   : > { %557 = vst [vmem:[%s275_s16] sm:$0xff] %v553_v54  ;;  %558 = vst [vmem:[%s275_s16 + $0x8] sm:$0xff] %v554_v55 }
 0x5f7   : > { %v548_v56 = vpop.xlane.xlu1 %547 }
 0x5f8   : > { %vm551_vm14 = vcmp.ge.f32.partialorder %v1539_v37, %v548_v56  ;;  %vm552_vm15 = vcmp.ge.f32.partialorder %v1541_v38, %v548_v56 }
 0x5f9   : > { %v555_v57 = vsel %vm551_vm14, %v1539_v37, 0.0  ;;  %v556_v58 = vsel %vm552_vm15, %v1541_v38, 0.0  ;;  %vm943_vm0 = vmpackc.low %vm551_vm14, %vm549_vm12 }
 0x5fa   : > { %559 = vst [vmem:[%s275_s16 + $0x10] sm:$0xff] %v555_v57  ;;  %560 = vst [vmem:[%s275_s16 + $0x18] sm:$0xff] %v556_v58 }
 0x5fb   : > { %vm940_vm1 = vmpackc.low %vm552_vm15, %vm550_vm13 }
 0x5fc   : > { %942 = vmatprep.mubr.msk.bf16.mxu1 %vm940_vm1, %v941_v59 }
 0x5fd   : > { %945 = vmatmul.mubr.msk.bf16.vlgmr.msra.gmra.mrb[0].mxu1 %vm943_vm0, %v944_v60 }
 0x5fe   : > { %1201 = shalt.err (!%p1198_p1)
}
 0x5ff   : > { %s1202_s24 = scalar_lea.hbm %s1578_s29, 512  ;;  %s1206_s16 = scalar_lea.hbm %s1660_s4, 1024 }
 0x600   : > { %p1203_p13 = scmp.ne.s32.totalorder %s1578_s29, %s1202_s24  ;;  %p1207_p4 = scmp.lt.u32.totalorder %s1578_s29, %s1660_s4 }
 0x601   : > { %p1208_p7 = scmp.lt.u32.totalorder %s1206_s16, %s1202_s24  ;;  %p1210_p11 = scmp.lt.u32.totalorder %s1202_s24, %s1578_s29 }
 0x602   : > { %p1204_p6 = pnand %p1203_p13, %p1675_p0 }
 0x603   : > { %p1209_p8 = por %p1208_p7, %p1207_p4 }
 0x604   : > { %p1205_p10 = pneg %p1204_p6 }
 0x605   : > { %p1211_p2 = por %p1210_p11, %p1209_p8 }
 0x607   : > { %p1212_p3 = pnand %p1211_p2, %p1205_p10 }
 0x609   : > { %1215 = shalt.err (!%p1212_p3)
}
 0x60a   : > { %s1301_s11 = smov 256   ;;  %s1302_s30 = smov 16  }
 0x60b   : > { %991 = dma.vmem_to_hbm [thread:$0]  (%p1675_p0), %s1572_s28, 512, %s1578_s29, %s735_s12, %s1301_s11, %s1301_s11, %s1302_s30  }
 0x60c   : > { %s282_s9 = scalar_lea.vmem [#allocation9], %s903_s6  ;;  %s958_s14 = sshll.u32 %s1357_s22, 8 }
 0x60d   : > { %s770_s10 = sshll.u32 %s282_s9, 4  ;;  %s1612_s15 = scalar_lea.hbm %s1661_s5, %s958_s14  ;;  %s1607_s10 = int_to_ptr.vmem [resolvable:$true] %s770_s10 }
 0x60e   : > { %s740_s6 = scalar_lea.sflag [#allocation10], %s1514_s27  ;;  %s1216_s28 = scalar_lea.vmem %s1607_s10, 256 }
 0x60f   : > { %p1217_p5 = scmp.ne.s32.totalorder %s1607_s10, %s1216_s28  ;;  %s1303_s22 = smov [#allocation9]  }
 0x610   : > { %s1220_s29 = sshll.u32 %s1303_s22, 4  ;;  %s1221_s29 = int_to_ptr.vmem [resolvable:$false] %s1220_s29 }
 0x611   : > { %p1218_p9 = pnand %p1217_p5, %p1675_p0  ;;  %s1222_s12 = scalar_lea.vmem %s1221_s29, 512 }
 0x612   : > { %p1223_p1 = scmp.lt.s32.totalorder %s1607_s10, %s1221_s29  ;;  %p1224_p13 = scmp.lt.s32.totalorder %s1222_s12, %s1216_s28 }
 0x613   : > { %p1219_p12 = pneg %p1218_p9 }
 0x614   : > { %p1225_p6 = por %p1224_p13, %p1223_p1 }
 0x616   : > { %p1226_p10 = pnand %p1225_p6, %p1219_p12 }
 0x6d0   : > { %v975_v32 = vpop.f32.mrb[0].mxu1 }
 0x6d1   : > { %v976_v35 = vpop.f32.mrb[1].mxu1 }
 0x6d2   : > { %v977_v37 = vadd.f32 %v976_v35, %v975_v32  ;;  %v978_v38 = vpop.f32.mrb[2].mxu1 }
 0x6d3   : > { %v979_v61 = vpop.f32.mrb[3].mxu1 }
 0x6d4   : > { %732 = vst [vmem:[%s282_s9] sm:$0xff] %v977_v37  ;;  %v980_v62 = vadd.f32 %v979_v61, %v978_v38 }
 0x6d6   : > { %733 = vst [vmem:[%s282_s9 + $0x8] sm:$0xff] %v980_v62 }
 0x6d7   : > { %1229 = shalt.err (!%p1226_p10)
}
 0x6d8   : > { %s1230_s16 = scalar_lea.hbm %s1612_s15, 256  ;;  %s1234_s11 = scalar_lea.hbm %s1661_s5, 512 }
 0x6d9   : > { %p1231_p4 = scmp.ne.s32.totalorder %s1612_s15, %s1230_s16  ;;  %p1235_p11 = scmp.lt.u32.totalorder %s1612_s15, %s1661_s5 }
 0x6da   : > { %p1236_p2 = scmp.lt.u32.totalorder %s1234_s11, %s1230_s16  ;;  %p1238_p5 = scmp.lt.u32.totalorder %s1230_s16, %s1612_s15 }
 0x6db   : > { %p1232_p7 = pnand %p1231_p4, %p1675_p0 }
 0x6dc   : > { %p1237_p3 = por %p1236_p2, %p1235_p11 }
 0x6dd   : > { %p1233_p8 = pneg %p1232_p7 }
 0x6de   : > { %p1239_p9 = por %p1238_p5, %p1237_p3 }
 0x6e0   : > { %p1240_p12 = pnand %p1239_p9, %p1233_p8 }
 0x6e2   : > { %1243 = shalt.err (!%p1240_p12)
}
 0x6e3   : > { %s1304_s14 = smov 128   ;;  %s1305_s24 = smov 8  }
 0x6e4   : > { %992 = dma.vmem_to_hbm [thread:$0]  (%p1675_p0), %s1607_s10, 256, %s1612_s15, %s740_s6, %s1304_s14, %s1304_s14, %s1305_s24  }
 0x6e5 PF: > { %s785_s26 = sand.u32 1, %s1278_s18   ;;  %p1676_p1 = scmp.ne.s32.totalorder %s1666_s25, 0 }
 0x6e6   : > { %p1677_p13 = scmp.ge.s32.totalorder %s1290_s21, 2  ;;  %s786_s28 = scalar_lea.sflag [#allocation4], %s785_s26 }
 0x6e8   : > { %p1007_p6 = pnand %p1677_p13, %p1676_p1 }
 0x6ea   : > { %1269 = dma.done.wait (!%p1007_p6), %s786_s28, 512  }
 0x6eb   : > { %1271 = vsyncadd (!%p1007_p6), %s786_s28, 4294966784  ;;  %s795_s22 = scalar_lea.sflag [#allocation10], %s785_s26 }
 0x6ec   : > { %1273 = dma.done.wait (!%p1007_p6), %s795_s22, 256  }
 0x6ed   : > { %1275 = vsyncadd (!%p1007_p6), %s795_s22, 4294967040  ;;  %p23_p0 = scmp.ge.s32.totalorder %s1449_s23, 4   ;;  %s1678_s18 = smov %s1282_s19 }
 0x6ee   : > { %s1679_s19 = smov %s1286_s20  ;;  %s1680_s20 = smov %s1458_s7 }
 0x6ef   : > { %s1681_s21 = smov %s1449_s23  ;;  %25 = sbr.rel (!%p23_p0) target bundleno = 8 (0x8), region = 106 }
 0x6f6   :  { %800 = vsyncpa [#allocation3], 1 }
 0x6f7   :  { %802 = vsyncpa [#allocation3 + $0x1], 1 }
 0x6f8   :  { %803 = vsyncpa [#allocation6], 1 }
 0x6f9   :  { %804 = vsyncpa [#allocation4], 1 }
 0x6fa   :  { %806 = vsyncpa [#allocation4 + $0x1], 1 }
 0x6fb   :  { %807 = vsyncpa [#allocation10], 1 }
 0x6fc   :  { %809 = vsyncpa [#allocation10 + $0x1], 1 }

</bundles_post_ra>
